<compile_context>
chip_gen: v6e
topology: v6e:2x2x1
jax: 0.10.0
libtpu: 0.0.40
codegen_flags: <defaults>
</compile_context>

<pallas_src>
import functools
import math

import jax
import jax.numpy as jnp
from jax.experimental import pallas as pl
from jax.experimental.pallas import tpu as pltpu

EPS = 1e-6  # TODO(synk): EPS constant is not defined in the source file; using 1e-6.
_LOGIT_CLIP = math.log((1.0 - EPS) / EPS)  # clip(p, EPS, 1-EPS) == clip(logit, -L, L)


def _round_up(x, m):
    return ((x + m - 1) // m) * m


def dbn_kernel(x_ref, V_ref, Wt_ref, bp_ref, bq_ref, uz_ref, ux_ref,
               q_ref, z_ref, xs_ref, p_ref, loss_ref,
               qs_scr, cd_scr, cb_scr, *, S, nx, nz):
    """One grid step == one DBN timestep t = pl.program_id(0)."""
    t = pl.program_id(0)
    bs = x_ref.shape[0]
    nz_p = V_ref.shape[1]
    nx_p = Wt_ref.shape[1]
    SB = S * bs

    mask_x = (jax.lax.broadcasted_iota(jnp.int32, (1, nx_p), 1) < nx).astype(jnp.float32)

    # ---- t == 0: compute q(z|x) and all loop-invariant log terms once ----
    @pl.when(t == 0)
    def _init():
        mask_z = (jax.lax.broadcasted_iota(jnp.int32, (1, nz_p), 1) < nz).astype(jnp.float32)

        # q(z|x) = sigmoid(x @ V + bq)   (bf16 MXU, f32 accumulate)
        aq = jnp.dot(x_ref[...], V_ref[...],
                     preferred_element_type=jnp.float32) + bq_ref[...]
        q_ref[...] = jax.nn.sigmoid(aq)

        # smooth_distribution == clamp p to [EPS, 1-EPS] == clip logits to [-L, L]
        # TODO(synk): smooth_distribution is not defined in the source; using this clamp.
        aq_c = jnp.clip(aq, -_LOGIT_CLIP, _LOGIT_CLIP)
        qs_scr[...] = jax.nn.sigmoid(aq_c)

        sp_q = jax.nn.softplus(-aq_c)            # -log q_s
        log_q, log_1mq = -sp_q, -aq_c - sp_q

        # prior p(z) = sigmoid(bq)
        az_c = jnp.clip(bq_ref[...], -_LOGIT_CLIP, _LOGIT_CLIP)
        sp_z = jax.nn.softplus(-az_c)
        log_pz, log_1mpz = -sp_z, -az_c - sp_z

        # For binary z:  log p(z) - log q(z|x) = base + sum_k z_k * delta_k
        delta = (log_pz - log_q) - (log_1mpz - log_1mq)        # (bs, nz_p)
        base = (log_1mpz - log_1mq) * mask_z                   # (bs, nz_p)
        cd_scr[...] = delta * mask_z
        cb_scr[...] = jnp.sum(base, axis=1, keepdims=True)     # (bs, 1)

    # ---- sample z_t ~ Bernoulli(q)   (broadcast q over the S sample copies) ----
    q_s = qs_scr[...]                                          # (bs, nz_p)
    u_z = uz_ref[0]                                            # (SB, nz_p)
    z3 = (u_z.reshape(S, bs, nz_p) < q_s[None]).astype(jnp.float32)
    z2 = z3.reshape(SB, nz_p)
    z_ref[0] = z2

    # ---- generate: p(x|z) = sigmoid(z @ W^T + bp)   (bf16 MXU) ----
    a = jnp.dot(z2.astype(jnp.bfloat16), Wt_ref[...],
                preferred_element_type=jnp.float32) + bp_ref[...]   # (SB, nx_p)
    p_ref[0] = jax.nn.sigmoid(a)

    a_c = jnp.clip(a, -_LOGIT_CLIP, _LOGIT_CLIP)               # smoothed logits
    p_s = jax.nn.sigmoid(a_c)

    # ---- sample x_t ~ Bernoulli(p_s) ----
    u_x = ux_ref[0]                                            # (SB, nx_p)
    xs = (u_x < p_s).astype(jnp.float32)
    xs_ref[0] = xs

    # ---- ELBO = E[ log p(z) + log p(x|z) - log q(z|x) ] ----
    # log p(x|z) per element from logits: x*logsig(a) + (1-x)*logsig(-a)
    #                                   = -softplus(-a) - (1-x)*a
    sp = jax.nn.softplus(-a_c)
    logpx_el = (-sp - (1.0 - xs) * a_c) * mask_x               # (SB, nx_p)

    kl_sum = jnp.sum(z3 * cd_scr[...][None]) + S * jnp.sum(cb_scr[...])
    elbo = (kl_sum + jnp.sum(logpx_el)) / SB
    # TODO(synk): compute_elbo_sampled_batched is not defined in the source;
    # using the mean over samples S and batch.
    loss_ref[0] = jnp.full(loss_ref.shape[1:], -elbo, dtype=jnp.float32)


def dbn_forward(x_in, W, V, bp, bq, key, *, S=8, T=3):
    bs, nx = x_in.shape
    nz = W.shape[1]
    SB = S * bs
    # TODO(synk): pad the sample*batch row dim for shapes where S*bs % 8 != 0.
    assert SB % 8 == 0, "S * batch must be a multiple of 8 for the row tiling"

    nx_p = _round_up(nx, 128)
    nz_p = _round_up(nz, 128)

    # zero-pad feature dims to 128-lane multiples; bf16 for MXU operands
    x_p = jnp.pad(x_in.astype(jnp.float32), ((0, 0), (0, nx_p - nx))).astype(jnp.bfloat16)
    V_p = jnp.pad(V.astype(jnp.float32), ((0, nx_p - nx), (0, nz_p - nz))).astype(jnp.bfloat16)
    Wt_p = jnp.pad(W.T.astype(jnp.float32), ((0, nz_p - nz), (0, nx_p - nx))).astype(jnp.bfloat16)
    bp_p = jnp.pad(bp.reshape(1, nx).astype(jnp.float32), ((0, 0), (0, nx_p - nx)))
    bq_p = jnp.pad(bq.reshape(1, nz).astype(jnp.float32), ((0, 0), (0, nz_p - nz)))

    # per-step Bernoulli uniforms, streamed in blocked on the T grid axis
    kz, kx = jax.random.split(key)
    u_z = jax.random.uniform(kz, (T, SB, nz_p), jnp.float32)
    u_x = jax.random.uniform(kx, (T, SB, nx_p), jnp.float32)

    compiler_params = None
    if jax.default_backend() == "tpu":
        # T axis is sequential: q / log constants live in scratch from t==0 on.
        compiler_params = pltpu.CompilerParams(
            dimension_semantics=("arbitrary",),
            vmem_limit_bytes=32 * 1024 * 1024,
        )

    kernel = functools.partial(dbn_kernel, S=S, nx=nx, nz=nz)
    q_p, z_p, xs_p, p_p, loss_p = pl.pallas_call(
        kernel,
        grid=(T,),
        in_specs=[
            pl.BlockSpec((bs, nx_p), lambda t: (0, 0)),        # x
            pl.BlockSpec((nx_p, nz_p), lambda t: (0, 0)),      # V
            pl.BlockSpec((nz_p, nx_p), lambda t: (0, 0)),      # W^T
            pl.BlockSpec((1, nx_p), lambda t: (0, 0)),         # bp
            pl.BlockSpec((1, nz_p), lambda t: (0, 0)),         # bq
            pl.BlockSpec((1, SB, nz_p), lambda t: (t, 0, 0)),  # uniforms for z_t
            pl.BlockSpec((1, SB, nx_p), lambda t: (t, 0, 0)),  # uniforms for x_t
        ],
        out_specs=[
            pl.BlockSpec((bs, nz_p), lambda t: (0, 0)),        # q(z|x)
            pl.BlockSpec((1, SB, nz_p), lambda t: (t, 0, 0)),  # z samples
            pl.BlockSpec((1, SB, nx_p), lambda t: (t, 0, 0)),  # x samples
            pl.BlockSpec((1, SB, nx_p), lambda t: (t, 0, 0)),  # p(x|z)
            pl.BlockSpec((1, 8, 128), lambda t: (t, 0, 0)),    # loss (scalar per t)
        ],
        out_shape=(
            jax.ShapeDtypeStruct((bs, nz_p), jnp.float32),
            jax.ShapeDtypeStruct((T, SB, nz_p), jnp.float32),
            jax.ShapeDtypeStruct((T, SB, nx_p), jnp.float32),
            jax.ShapeDtypeStruct((T, SB, nx_p), jnp.float32),
            jax.ShapeDtypeStruct((T, 8, 128), jnp.float32),
        ),
        scratch_shapes=[
            pltpu.VMEM((bs, nz_p), jnp.float32),   # smoothed q (sampling threshold)
            pltpu.VMEM((bs, nz_p), jnp.float32),   # combined (logpz - logq) delta
            pltpu.VMEM((bs, 1), jnp.float32),      # combined (logpz - logq) base
        ],
        compiler_params=compiler_params,
    )(x_p, V_p, Wt_p, bp_p, bq_p, u_z, u_x)

    # glue: strip padding, reshape to PyTorch's (T, S, bs, feat) convention
    q = q_p[:, :nz]
    z_T = z_p[:, :, :nz].reshape(T, S, bs, nz)
    xs_T = xs_p[:, :, :nx].reshape(T, S, bs, nx)
    p_T = p_p[:, :, :nx].reshape(T, S, bs, nx)
    loss = loss_p[:, 0, 0]                     # (T,)
    pz = jax.nn.sigmoid(bq)                    # prior probs
    return {
        "q_samples": (jnp.broadcast_to(x_in, (T, S, bs, nx)), z_T),  # [x expanded, z]
        "q_probs": q,                                                 # q(z|x)
        "p_samples": (z_T, xs_T),                                     # [z, x ~ p(x|z)]
        "p_probs": (pz, p_T),                                         # [p(z), p(x|z)]
        "loss": loss,
    }


def glorot_init(key, shape):
    # deterministic glorot-style init (glorot_init from source not available)
    if len(shape) == 2:
        fan_in, fan_out = shape
    else:
        fan_in = fan_out = shape[0]
    lim = (6.0 / (fan_in + fan_out)) ** 0.5
    return jax.random.uniform(key, shape, jnp.float32, -lim, lim)


if __name__ == "__main__":
    # TODO(synk): 'greedy'/'random' constrain modes (topk / binary_row_reduce) are not
    # implemented; only the default mode='vanilla' path (a no-op) is reproduced.
    bs, nx, nz, S, T = 2, 32, 16, 8, 3

    key = jax.random.PRNGKey(0)
    kx, kW, kV, kbp, kbq, krng = jax.random.split(key, 6)
    x_in = (jax.random.uniform(kx, (bs, nx)) > 0.5).astype(jnp.float32)
    W = glorot_init(kW, (nx, nz))
    V = glorot_init(kV, (nx, nz))
    bp = glorot_init(kbp, (nx,))
    bq = glorot_init(kbq, (nz,))

    out = dbn_forward(x_in, W, V, bp, bq, krng, S=S, T=T)
    out = jax.tree_util.tree_map(jax.block_until_ready, out)

    # shape checks
    assert out["loss"].shape == (T,)
    assert out["q_probs"].shape == (bs, nz)
    assert out["q_samples"][1].shape == (T, S, bs, nz)
    assert out["p_samples"][1].shape == (T, S, bs, nx)
    assert out["p_probs"][1].shape == (T, S, bs, nx)

    # numerical sanity checks (bf16 MXU operands -> loose tolerance)
    q_ref = jax.nn.sigmoid(x_in @ V + bq)
    assert bool(jnp.max(jnp.abs(out["q_probs"] - q_ref)) < 2e-2)
    z0 = out["q_samples"][1][0]                                 # (S, bs, nz)
    p0_ref = jax.nn.sigmoid(jnp.einsum("sbz,xz->sbx", z0, W) + bp)
    assert bool(jnp.max(jnp.abs(out["p_probs"][1][0] - p0_ref)) < 2e-2)
    assert bool(jnp.all(jnp.isfinite(out["loss"])))
    assert bool(jnp.all((out["q_samples"][1] == 0) | (out["q_samples"][1] == 1)))

    print("KERNEL_OK")
</pallas_src>

<mosaic_0001>
module attributes {stable_mosaic.version = 11 : i64} {
  func.func @dbn_kernel(%arg0: i32, %arg1: memref<2x128xbf16, #tpu.memory_space<vmem>>, %arg2: memref<128x128xbf16, #tpu.memory_space<vmem>>, %arg3: memref<128x128xbf16, #tpu.memory_space<vmem>>, %arg4: memref<1x128xf32, #tpu.memory_space<vmem>>, %arg5: memref<1x128xf32, #tpu.memory_space<vmem>>, %arg6: memref<1x16x128xf32, #tpu.memory_space<vmem>>, %arg7: memref<1x16x128xf32, #tpu.memory_space<vmem>>, %arg8: memref<2x128xf32, #tpu.memory_space<vmem>>, %arg9: memref<1x16x128xf32, #tpu.memory_space<vmem>>, %arg10: memref<1x16x128xf32, #tpu.memory_space<vmem>>, %arg11: memref<1x16x128xf32, #tpu.memory_space<vmem>>, %arg12: memref<1x8x128xf32, #tpu.memory_space<vmem>>, %arg13: memref<2x128xf32, #tpu.memory_space<vmem>>, %arg14: memref<2x128xf32, #tpu.memory_space<vmem>>, %arg15: memref<2x1xf32, #tpu.memory_space<vmem>>) attributes {dimension_semantics = [#tpu.dimension_semantics<arbitrary>], iteration_bounds = array<i64: 3>, scalar_prefetch = 0 : i64, scratch_operands = 3 : i64, tpu.core_type = #tpu.core_type<tc>, window_params = [{pipeline_mode = #tpu.pipeline_mode<synchronous>, transform_indices = @transform_0, window_bounds = array<i64: 2, 128>}, {pipeline_mode = #tpu.pipeline_mode<synchronous>, transform_indices = @transform_1, window_bounds = array<i64: 128, 128>}, {pipeline_mode = #tpu.pipeline_mode<synchronous>, transform_indices = @transform_2, window_bounds = array<i64: 128, 128>}, {pipeline_mode = #tpu.pipeline_mode<synchronous>, transform_indices = @transform_3, window_bounds = array<i64: 1, 128>}, {pipeline_mode = #tpu.pipeline_mode<synchronous>, transform_indices = @transform_4, window_bounds = array<i64: 1, 128>}, {transform_indices = @transform_5, window_bounds = array<i64: 1, 16, 128>}, {transform_indices = @transform_6, window_bounds = array<i64: 1, 16, 128>}, {pipeline_mode = #tpu.pipeline_mode<synchronous>, transform_indices = @transform_7, window_bounds = array<i64: 2, 128>}, {transform_indices = @transform_8, window_bounds = array<i64: 1, 16, 128>}, {transform_indices = @transform_9, window_bounds = array<i64: 1, 16, 128>}, {transform_indices = @transform_10, window_bounds = array<i64: 1, 16, 128>}, {transform_indices = @transform_11, window_bounds = array<i64: 1, 8, 128>}]} {
    %0 = tpu.iota {dimensions = array<i32: 1>} : vector<1x128xi32>
    %c32_i32 = arith.constant 32 : i32
    %1 = vector.broadcast %c32_i32 : i32 to vector<1x128xi32>
    %2 = arith.cmpi slt, %0, %1 : vector<1x128xi32>
    %3 = arith.extui %2 : vector<1x128xi1> to vector<1x128xi32>
    %4 = arith.sitofp %3 : vector<1x128xi32> to vector<1x128xf32>
    %c0_i32 = arith.constant 0 : i32
    %5 = arith.cmpi eq, %arg0, %c0_i32 : i32
    %6 = arith.extui %5 : i1 to i32
    %c0_i32_0 = arith.constant 0 : i32
    %7 = arith.cmpi ne, %6, %c0_i32_0 : i32
    scf.if %7 {
      %102 = tpu.iota {dimensions = array<i32: 1>} : vector<1x128xi32>
      %c16_i32 = arith.constant 16 : i32
      %103 = vector.broadcast %c16_i32 : i32 to vector<1x128xi32>
      %104 = arith.cmpi slt, %102, %103 : vector<1x128xi32>
      %105 = arith.extui %104 : vector<1x128xi1> to vector<1x128xi32>
      %106 = arith.sitofp %105 : vector<1x128xi32> to vector<1x128xf32>
      %c0_43 = arith.constant 0 : index
      %c0_44 = arith.constant 0 : index
      %107 = vector.load %arg1[%c0_43, %c0_44] : memref<2x128xbf16, #tpu.memory_space<vmem>>, vector<2x128xbf16>
      %c0_45 = arith.constant 0 : index
      %c0_46 = arith.constant 0 : index
      %108 = vector.load %arg2[%c0_45, %c0_46] : memref<128x128xbf16, #tpu.memory_space<vmem>>, vector<128x128xbf16>
      %cst_47 = arith.constant dense<0.000000e+00> : vector<2x128xf32>
      %109 = tpu.matmul %107, %108, %cst_47 {dimension_numbers = #tpu.dot_dimension_numbers<[1], [0], [0], [1], [0, 0, 1, 1], [], []>} : vector<2x128xbf16>, vector<128x128xbf16>, vector<2x128xf32> -> vector<2x128xf32>
      %c0_48 = arith.constant 0 : index
      %c0_49 = arith.constant 0 : index
      %110 = vector.load %arg5[%c0_48, %c0_49] : memref<1x128xf32, #tpu.memory_space<vmem>>, vector<1x128xf32>
      %111 = vector.broadcast %110 : vector<1x128xf32> to vector<2x128xf32>
      %112 = arith.addf %109, %111 : vector<2x128xf32>
      %113 = arith.negf %112 : vector<2x128xf32>
      %114 = math.exp %113 : vector<2x128xf32>
      %cst_50 = arith.constant 1.000000e+00 : f32
      %115 = vector.broadcast %cst_50 : f32 to vector<2x128xf32>
      %116 = arith.addf %115, %114 : vector<2x128xf32>
      %117 = arith.divf %115, %116 : vector<2x128xf32>
      %c0_51 = arith.constant 0 : index
      %c0_52 = arith.constant 0 : index
      %118 = vector.load %arg8[%c0_51, %c0_52] : memref<2x128xf32, #tpu.memory_space<vmem>>, vector<2x128xf32>
      tpu.vector_store %arg8[%c0_51, %c0_52], %117 {strides = array<i32>} : memref<2x128xf32, #tpu.memory_space<vmem>>, vector<2x128xf32>,
      %cst_53 = arith.constant -13.8155098 : f32
      %cst_54 = arith.constant 13.8155098 : f32
      %119 = vector.broadcast %cst_53 : f32 to vector<2x128xf32>
      %120 = arith.maximumf %119, %112 : vector<2x128xf32>
      %121 = vector.broadcast %cst_54 : f32 to vector<2x128xf32>
      %122 = arith.minimumf %121, %120 : vector<2x128xf32>
      %123 = arith.negf %122 : vector<2x128xf32>
      %124 = math.exp %123 : vector<2x128xf32>
      %cst_55 = arith.constant 1.000000e+00 : f32
      %125 = vector.broadcast %cst_55 : f32 to vector<2x128xf32>
      %126 = arith.addf %125, %124 : vector<2x128xf32>
      %127 = arith.divf %125, %126 : vector<2x128xf32>
      %c0_56 = arith.constant 0 : index
      %c0_57 = arith.constant 0 : index
      %128 = vector.load %arg13[%c0_56, %c0_57] : memref<2x128xf32, #tpu.memory_space<vmem>>, vector<2x128xf32>
      tpu.vector_store %arg13[%c0_56, %c0_57], %127 {strides = array<i32>} : memref<2x128xf32, #tpu.memory_space<vmem>>, vector<2x128xf32>,
      %cst_58 = arith.constant 0.000000e+00 : f32
      %129 = vector.broadcast %cst_58 : f32 to vector<2x128xf32>
      %130 = arith.subf %129, %122 : vector<2x128xf32>
      %cst_59 = arith.constant 0.000000e+00 : f32
      %131 = vector.broadcast %cst_59 : f32 to vector<2x128xf32>
      %132 = arith.maximumf %130, %131 : vector<2x128xf32>
      %133 = vector.broadcast %cst_59 : f32 to vector<2x128xf32>
      %134 = arith.subf %130, %133 : vector<2x128xf32>
      %135 = arith.cmpf one, %134, %134 : vector<2x128xf32>
      %136 = vector.broadcast %cst_59 : f32 to vector<2x128xf32>
      %137 = arith.addf %130, %136 : vector<2x128xf32>
      %138 = math.absf %134 : vector<2x128xf32>
      %cst_60 = arith.constant 0.000000e+00 : f32
      %139 = vector.broadcast %cst_60 : f32 to vector<2x128xf32>
      %140 = arith.subf %139, %138 : vector<2x128xf32>
      %141 = math.exp %140 : vector<2x128xf32>
      %142 = math.log1p %141 : vector<2x128xf32>
      %143 = arith.addf %132, %142 : vector<2x128xf32>
      %144 = arith.select %135, %137, %143 : vector<2x128xi1>, vector<2x128xf32>
      %cst_61 = arith.constant 0.000000e+00 : f32
      %145 = vector.broadcast %cst_61 : f32 to vector<2x128xf32>
      %146 = arith.subf %145, %144 : vector<2x128xf32>
      %cst_62 = arith.constant 0.000000e+00 : f32
      %147 = vector.broadcast %cst_62 : f32 to vector<2x128xf32>
      %148 = arith.subf %147, %122 : vector<2x128xf32>
      %149 = arith.subf %148, %144 : vector<2x128xf32>
      %c0_63 = arith.constant 0 : index
      %c0_64 = arith.constant 0 : index
      %150 = vector.load %arg5[%c0_63, %c0_64] : memref<1x128xf32, #tpu.memory_space<vmem>>, vector<1x128xf32>
      %cst_65 = arith.constant -13.8155098 : f32
      %cst_66 = arith.constant 13.8155098 : f32
      %151 = vector.broadcast %cst_65 : f32 to vector<1x128xf32>
      %152 = arith.maximumf %151, %150 : vector<1x128xf32>
      %153 = vector.broadcast %cst_66 : f32 to vector<1x128xf32>
      %154 = arith.minimumf %153, %152 : vector<1x128xf32>
      %cst_67 = arith.constant 0.000000e+00 : f32
      %155 = vector.broadcast %cst_67 : f32 to vector<1x128xf32>
      %156 = arith.subf %155, %154 : vector<1x128xf32>
      %cst_68 = arith.constant 0.000000e+00 : f32
      %157 = vector.broadcast %cst_68 : f32 to vector<1x128xf32>
      %158 = arith.maximumf %156, %157 : vector<1x128xf32>
      %159 = vector.broadcast %cst_68 : f32 to vector<1x128xf32>
      %160 = arith.subf %156, %159 : vector<1x128xf32>
      %161 = arith.cmpf one, %160, %160 : vector<1x128xf32>
      %162 = vector.broadcast %cst_68 : f32 to vector<1x128xf32>
      %163 = arith.addf %156, %162 : vector<1x128xf32>
      %164 = math.absf %160 : vector<1x128xf32>
      %cst_69 = arith.constant 0.000000e+00 : f32
      %165 = vector.broadcast %cst_69 : f32 to vector<1x128xf32>
      %166 = arith.subf %165, %164 : vector<1x128xf32>
      %167 = math.exp %166 : vector<1x128xf32>
      %168 = math.log1p %167 : vector<1x128xf32>
      %169 = arith.addf %158, %168 : vector<1x128xf32>
      %170 = arith.select %161, %163, %169 : vector<1x128xi1>, vector<1x128xf32>
      %cst_70 = arith.constant 0.000000e+00 : f32
      %171 = vector.broadcast %cst_70 : f32 to vector<1x128xf32>
      %172 = arith.subf %171, %170 : vector<1x128xf32>
      %cst_71 = arith.constant 0.000000e+00 : f32
      %173 = vector.broadcast %cst_71 : f32 to vector<1x128xf32>
      %174 = arith.subf %173, %154 : vector<1x128xf32>
      %175 = arith.subf %174, %170 : vector<1x128xf32>
      %176 = vector.broadcast %172 : vector<1x128xf32> to vector<2x128xf32>
      %177 = arith.subf %176, %146 : vector<2x128xf32>
      %178 = vector.broadcast %175 : vector<1x128xf32> to vector<2x128xf32>
      %179 = arith.subf %178, %149 : vector<2x128xf32>
      %180 = arith.subf %177, %179 : vector<2x128xf32>
      %181 = vector.broadcast %175 : vector<1x128xf32> to vector<2x128xf32>
      %182 = arith.subf %181, %149 : vector<2x128xf32>
      %183 = vector.broadcast %106 : vector<1x128xf32> to vector<2x128xf32>
      %184 = arith.mulf %182, %183 : vector<2x128xf32>
      %185 = vector.broadcast %106 : vector<1x128xf32> to vector<2x128xf32>
      %186 = arith.mulf %180, %185 : vector<2x128xf32>
      %c0_72 = arith.constant 0 : index
      %c0_73 = arith.constant 0 : index
      %187 = vector.load %arg14[%c0_72, %c0_73] : memref<2x128xf32, #tpu.memory_space<vmem>>, vector<2x128xf32>
      tpu.vector_store %arg14[%c0_72, %c0_73], %186 {strides = array<i32>} : memref<2x128xf32, #tpu.memory_space<vmem>>, vector<2x128xf32>,
      %cst_74 = arith.constant dense<0.000000e+00> : vector<2xf32>
      %188 = vector.multi_reduction <add>, %184, %cst_74 [1] : vector<2x128xf32> to vector<2xf32>
      %189 = vector.shape_cast %188 : vector<2xf32> to vector<2x1xf32>
      %c0_75 = arith.constant 0 : index
      %c0_76 = arith.constant 0 : index
      %190 = vector.load %arg15[%c0_75, %c0_76] : memref<2x1xf32, #tpu.memory_space<vmem>>, vector<2x1xf32>
      tpu.vector_store %arg15[%c0_75, %c0_76], %189 {strides = array<i32>} : memref<2x1xf32, #tpu.memory_space<vmem>>, vector<2x1xf32>,
    } else {
    }
    %c0 = arith.constant 0 : index
    %c0_1 = arith.constant 0 : index
    %8 = vector.load %arg13[%c0, %c0_1] : memref<2x128xf32, #tpu.memory_space<vmem>>, vector<2x128xf32>
    %c0_2 = arith.constant 0 : index
    %c0_3 = arith.constant 0 : index
    %c0_4 = arith.constant 0 : index
    %9 = vector.load %arg6[%c0_2, %c0_3, %c0_4] : memref<1x16x128xf32, #tpu.memory_space<vmem>>, vector<1x16x128xf32>
    %10 = vector.shape_cast %9 : vector<1x16x128xf32> to vector<16x128xf32>
    %11 = vector.shape_cast %10 : vector<16x128xf32> to vector<8x2x128xf32>
    %12 = vector.shape_cast %8 : vector<2x128xf32> to vector<1x2x128xf32>
    %13 = vector.broadcast %12 : vector<1x2x128xf32> to vector<8x2x128xf32>
    %14 = arith.cmpf olt, %11, %13 : vector<8x2x128xf32>
    %15 = arith.extui %14 : vector<8x2x128xi1> to vector<8x2x128xi32>
    %16 = arith.sitofp %15 : vector<8x2x128xi32> to vector<8x2x128xf32>
    %17 = vector.shape_cast %16 : vector<8x2x128xf32> to vector<16x128xf32>
    %c0_5 = arith.constant 0 : index
    %c0_6 = arith.constant 0 : index
    %c0_7 = arith.constant 0 : index
    %18 = vector.load %arg9[%c0_5, %c0_6, %c0_7] : memref<1x16x128xf32, #tpu.memory_space<vmem>>, vector<1x16x128xf32>
    %19 = vector.shape_cast %18 : vector<1x16x128xf32> to vector<16x128xf32>
    %20 = vector.shape_cast %17 : vector<16x128xf32> to vector<1x16x128xf32>
    tpu.vector_store %arg9[%c0_5, %c0_6, %c0_7], %20 {strides = array<i32>} : memref<1x16x128xf32, #tpu.memory_space<vmem>>, vector<1x16x128xf32>,
    %21 = arith.truncf %17 : vector<16x128xf32> to vector<16x128xbf16>
    %c0_8 = arith.constant 0 : index
    %c0_9 = arith.constant 0 : index
    %22 = vector.load %arg3[%c0_8, %c0_9] : memref<128x128xbf16, #tpu.memory_space<vmem>>, vector<128x128xbf16>
    %cst = arith.constant dense<0.000000e+00> : vector<16x128xf32>
    %23 = tpu.matmul %21, %22, %cst {dimension_numbers = #tpu.dot_dimension_numbers<[1], [0], [0], [1], [0, 0, 1, 1], [], []>} : vector<16x128xbf16>, vector<128x128xbf16>, vector<16x128xf32> -> vector<16x128xf32>
    %c0_10 = arith.constant 0 : index
    %c0_11 = arith.constant 0 : index
    %24 = vector.load %arg4[%c0_10, %c0_11] : memref<1x128xf32, #tpu.memory_space<vmem>>, vector<1x128xf32>
    %25 = vector.broadcast %24 : vector<1x128xf32> to vector<16x128xf32>
    %26 = arith.addf %23, %25 : vector<16x128xf32>
    %27 = arith.negf %26 : vector<16x128xf32>
    %28 = math.exp %27 : vector<16x128xf32>
    %cst_12 = arith.constant 1.000000e+00 : f32
    %29 = vector.broadcast %cst_12 : f32 to vector<16x128xf32>
    %30 = arith.addf %29, %28 : vector<16x128xf32>
    %31 = arith.divf %29, %30 : vector<16x128xf32>
    %c0_13 = arith.constant 0 : index
    %c0_14 = arith.constant 0 : index
    %c0_15 = arith.constant 0 : index
    %32 = vector.load %arg11[%c0_13, %c0_14, %c0_15] : memref<1x16x128xf32, #tpu.memory_space<vmem>>, vector<1x16x128xf32>
    %33 = vector.shape_cast %32 : vector<1x16x128xf32> to vector<16x128xf32>
    %34 = vector.shape_cast %31 : vector<16x128xf32> to vector<1x16x128xf32>
    tpu.vector_store %arg11[%c0_13, %c0_14, %c0_15], %34 {strides = array<i32>} : memref<1x16x128xf32, #tpu.memory_space<vmem>>, vector<1x16x128xf32>,
    %cst_16 = arith.constant -13.8155098 : f32
    %cst_17 = arith.constant 13.8155098 : f32
    %35 = vector.broadcast %cst_16 : f32 to vector<16x128xf32>
    %36 = arith.maximumf %35, %26 : vector<16x128xf32>
    %37 = vector.broadcast %cst_17 : f32 to vector<16x128xf32>
    %38 = arith.minimumf %37, %36 : vector<16x128xf32>
    %39 = arith.negf %38 : vector<16x128xf32>
    %40 = math.exp %39 : vector<16x128xf32>
    %cst_18 = arith.constant 1.000000e+00 : f32
    %41 = vector.broadcast %cst_18 : f32 to vector<16x128xf32>
    %42 = arith.addf %41, %40 : vector<16x128xf32>
    %43 = arith.divf %41, %42 : vector<16x128xf32>
    %c0_19 = arith.constant 0 : index
    %c0_20 = arith.constant 0 : index
    %c0_21 = arith.constant 0 : index
    %44 = vector.load %arg7[%c0_19, %c0_20, %c0_21] : memref<1x16x128xf32, #tpu.memory_space<vmem>>, vector<1x16x128xf32>
    %45 = vector.shape_cast %44 : vector<1x16x128xf32> to vector<16x128xf32>
    %46 = arith.cmpf olt, %45, %43 : vector<16x128xf32>
    %47 = arith.extui %46 : vector<16x128xi1> to vector<16x128xi32>
    %48 = arith.sitofp %47 : vector<16x128xi32> to vector<16x128xf32>
    %c0_22 = arith.constant 0 : index
    %c0_23 = arith.constant 0 : index
    %c0_24 = arith.constant 0 : index
    %49 = vector.load %arg10[%c0_22, %c0_23, %c0_24] : memref<1x16x128xf32, #tpu.memory_space<vmem>>, vector<1x16x128xf32>
    %50 = vector.shape_cast %49 : vector<1x16x128xf32> to vector<16x128xf32>
    %51 = vector.shape_cast %48 : vector<16x128xf32> to vector<1x16x128xf32>
    tpu.vector_store %arg10[%c0_22, %c0_23, %c0_24], %51 {strides = array<i32>} : memref<1x16x128xf32, #tpu.memory_space<vmem>>, vector<1x16x128xf32>,
    %cst_25 = arith.constant 0.000000e+00 : f32
    %52 = vector.broadcast %cst_25 : f32 to vector<16x128xf32>
    %53 = arith.subf %52, %38 : vector<16x128xf32>
    %cst_26 = arith.constant 0.000000e+00 : f32
    %54 = vector.broadcast %cst_26 : f32 to vector<16x128xf32>
    %55 = arith.maximumf %53, %54 : vector<16x128xf32>
    %56 = vector.broadcast %cst_26 : f32 to vector<16x128xf32>
    %57 = arith.subf %53, %56 : vector<16x128xf32>
    %58 = arith.cmpf one, %57, %57 : vector<16x128xf32>
    %59 = vector.broadcast %cst_26 : f32 to vector<16x128xf32>
    %60 = arith.addf %53, %59 : vector<16x128xf32>
    %61 = math.absf %57 : vector<16x128xf32>
    %cst_27 = arith.constant 0.000000e+00 : f32
    %62 = vector.broadcast %cst_27 : f32 to vector<16x128xf32>
    %63 = arith.subf %62, %61 : vector<16x128xf32>
    %64 = math.exp %63 : vector<16x128xf32>
    %65 = math.log1p %64 : vector<16x128xf32>
    %66 = arith.addf %55, %65 : vector<16x128xf32>
    %67 = arith.select %58, %60, %66 : vector<16x128xi1>, vector<16x128xf32>
    %cst_28 = arith.constant 0.000000e+00 : f32
    %68 = vector.broadcast %cst_28 : f32 to vector<16x128xf32>
    %69 = arith.subf %68, %67 : vector<16x128xf32>
    %cst_29 = arith.constant 1.000000e+00 : f32
    %70 = vector.broadcast %cst_29 : f32 to vector<16x128xf32>
    %71 = arith.subf %70, %48 : vector<16x128xf32>
    %72 = arith.mulf %71, %38 : vector<16x128xf32>
    %73 = arith.subf %69, %72 : vector<16x128xf32>
    %74 = vector.broadcast %4 : vector<1x128xf32> to vector<16x128xf32>
    %75 = arith.mulf %73, %74 : vector<16x128xf32>
    %c0_30 = arith.constant 0 : index
    %c0_31 = arith.constant 0 : index
    %76 = vector.load %arg14[%c0_30, %c0_31] : memref<2x128xf32, #tpu.memory_space<vmem>>, vector<2x128xf32>
    %77 = vector.shape_cast %76 : vector<2x128xf32> to vector<1x2x128xf32>
    %78 = vector.broadcast %77 : vector<1x2x128xf32> to vector<8x2x128xf32>
    %79 = arith.mulf %16, %78 : vector<8x2x128xf32>
    %80 = vector.shape_cast %79 : vector<8x2x128xf32> to vector<1x8x2x128xf32>
    %cst_32 = arith.constant dense<0.000000e+00> : vector<1xf32>
    %81 = vector.multi_reduction <add>, %80, %cst_32 [1, 2, 3] : vector<1x8x2x128xf32> to vector<1xf32>
    %82 = vector.shape_cast %81 : vector<1xf32> to vector<1x1x1x1xf32>
    %83 = vector.extract %82[0, 0, 0, 0] : f32 from vector<1x1x1x1xf32>
    %c0_33 = arith.constant 0 : index
    %c0_34 = arith.constant 0 : index
    %84 = vector.load %arg15[%c0_33, %c0_34] : memref<2x1xf32, #tpu.memory_space<vmem>>, vector<2x1xf32>
    %85 = vector.shape_cast %84 : vector<2x1xf32> to vector<1x2x1xf32>
    %cst_35 = arith.constant dense<0.000000e+00> : vector<1xf32>
    %86 = vector.multi_reduction <add>, %85, %cst_35 [1, 2] : vector<1x2x1xf32> to vector<1xf32>
    %87 = vector.shape_cast %86 : vector<1xf32> to vector<1x1x1xf32>
    %88 = vector.extract %87[0, 0, 0] : f32 from vector<1x1x1xf32>
    %cst_36 = arith.constant 8.000000e+00 : f32
    %89 = arith.mulf %cst_36, %88 : f32
    %90 = arith.addf %83, %89 : f32
    %91 = vector.shape_cast %75 : vector<16x128xf32> to vector<1x16x128xf32>
    %cst_37 = arith.constant dense<0.000000e+00> : vector<1xf32>
    %92 = vector.multi_reduction <add>, %91, %cst_37 [1, 2] : vector<1x16x128xf32> to vector<1xf32>
    %93 = vector.shape_cast %92 : vector<1xf32> to vector<1x1x1xf32>
    %94 = vector.extract %93[0, 0, 0] : f32 from vector<1x1x1xf32>
    %95 = arith.addf %90, %94 : f32
    %cst_38 = arith.constant 1.600000e+01 : f32
    %96 = arith.divf %95, %cst_38 : f32
    %cst_39 = arith.constant 0.000000e+00 : f32
    %97 = arith.subf %cst_39, %96 : f32
    %98 = vector.broadcast %97 : f32 to vector<8x128xf32>
    %c0_40 = arith.constant 0 : index
    %c0_41 = arith.constant 0 : index
    %c0_42 = arith.constant 0 : index
    %99 = vector.load %arg12[%c0_40, %c0_41, %c0_42] : memref<1x8x128xf32, #tpu.memory_space<vmem>>, vector<1x8x128xf32>
    %100 = vector.shape_cast %99 : vector<1x8x128xf32> to vector<8x128xf32>
    %101 = vector.shape_cast %98 : vector<8x128xf32> to vector<1x8x128xf32>
    tpu.vector_store %arg12[%c0_40, %c0_41, %c0_42], %101 {strides = array<i32>} : memref<1x8x128xf32, #tpu.memory_space<vmem>>, vector<1x8x128xf32>,
    return
  }
  func.func @transform_0(%arg0: i32) -> (i32, i32) {
    %c0_i32 = arith.constant 0 : i32
    %c0_i32_0 = arith.constant 0 : i32
    %c0_i32_1 = arith.constant 0 : i32
    return %c0_i32, %c0_i32_0 : i32, i32
  }
  func.func @transform_1(%arg0: i32) -> (i32, i32) {
    %c0_i32 = arith.constant 0 : i32
    %c0_i32_0 = arith.constant 0 : i32
    %c0_i32_1 = arith.constant 0 : i32
    return %c0_i32, %c0_i32_0 : i32, i32
  }
  func.func @transform_2(%arg0: i32) -> (i32, i32) {
    %c0_i32 = arith.constant 0 : i32
    %c0_i32_0 = arith.constant 0 : i32
    %c0_i32_1 = arith.constant 0 : i32
    return %c0_i32, %c0_i32_0 : i32, i32
  }
  func.func @transform_3(%arg0: i32) -> (i32, i32) {
    %c0_i32 = arith.constant 0 : i32
    %c0_i32_0 = arith.constant 0 : i32
    %c0_i32_1 = arith.constant 0 : i32
    return %c0_i32, %c0_i32_0 : i32, i32
  }
  func.func @transform_4(%arg0: i32) -> (i32, i32) {
    %c0_i32 = arith.constant 0 : i32
    %c0_i32_0 = arith.constant 0 : i32
    %c0_i32_1 = arith.constant 0 : i32
    return %c0_i32, %c0_i32_0 : i32, i32
  }
  func.func @transform_5(%arg0: i32) -> (i32, i32, i32) {
    %c0_i32 = arith.constant 0 : i32
    %c0_i32_0 = arith.constant 0 : i32
    %c0_i32_1 = arith.constant 0 : i32
    return %arg0, %c0_i32, %c0_i32_0 : i32, i32, i32
  }
  func.func @transform_6(%arg0: i32) -> (i32, i32, i32) {
    %c0_i32 = arith.constant 0 : i32
    %c0_i32_0 = arith.constant 0 : i32
    %c0_i32_1 = arith.constant 0 : i32
    return %arg0, %c0_i32, %c0_i32_0 : i32, i32, i32
  }
  func.func @transform_7(%arg0: i32) -> (i32, i32) {
    %c0_i32 = arith.constant 0 : i32
    %c0_i32_0 = arith.constant 0 : i32
    %c0_i32_1 = arith.constant 0 : i32
    return %c0_i32, %c0_i32_0 : i32, i32
  }
  func.func @transform_8(%arg0: i32) -> (i32, i32, i32) {
    %c0_i32 = arith.constant 0 : i32
    %c0_i32_0 = arith.constant 0 : i32
    %c0_i32_1 = arith.constant 0 : i32
    return %arg0, %c0_i32, %c0_i32_0 : i32, i32, i32
  }
  func.func @transform_9(%arg0: i32) -> (i32, i32, i32) {
    %c0_i32 = arith.constant 0 : i32
    %c0_i32_0 = arith.constant 0 : i32
    %c0_i32_1 = arith.constant 0 : i32
    return %arg0, %c0_i32, %c0_i32_0 : i32, i32, i32
  }
  func.func @transform_10(%arg0: i32) -> (i32, i32, i32) {
    %c0_i32 = arith.constant 0 : i32
    %c0_i32_0 = arith.constant 0 : i32
    %c0_i32_1 = arith.constant 0 : i32
    return %arg0, %c0_i32, %c0_i32_0 : i32, i32, i32
  }
  func.func @transform_11(%arg0: i32) -> (i32, i32, i32) {
    %c0_i32 = arith.constant 0 : i32
    %c0_i32_0 = arith.constant 0 : i32
    %c0_i32_1 = arith.constant 0 : i32
    return %arg0, %c0_i32, %c0_i32_0 : i32, i32, i32
  }
}

</mosaic_0001>

<bundles_post_ra>
// kernel: tpu_custom_call.1
= control target key start
LH: loop header
LB: loop body
LE: loop exit
PB: predicated region body
PF: predicated region fallthrough
CT: control target
= control target key end

     0   :  { %s2612_s0 = inlined_call_operand.hbm [shape: bf16[2,128], index: 0, kind: input, shape index: {}]   ;;  %s2613_s1 = inlined_call_operand.hbm [shape: bf16[128,128], index: 1, kind: input, shape index: {}]   ;;  %s2614_s2 = inlined_call_operand.hbm [shape: bf16[128,128], index: 2, kind: input, shape index: {}]   ;;  %s2615_s3 = inlined_call_operand.vmem [shape: f32[1,128], index: 3, kind: input, shape index: {}]   ;;  %s2616_s4 = inlined_call_operand.vmem [shape: f32[1,128], index: 4, kind: input, shape index: {}]   ;;  %s2617_s5 = inlined_call_operand.hbm [shape: f32[3,16,128], index: 5, kind: input, shape index: {}]   ;;  %s2618_s6 = inlined_call_operand.hbm [shape: f32[3,16,128], index: 6, kind: input, shape index: {}]   ;;  %s2619_s7 = inlined_call_operand.hbm [shape: f32[2,128], index: 7, kind: output, shape index: {0}]   ;;  %s2620_s8 = inlined_call_operand.hbm [shape: f32[3,16,128], index: 8, kind: output, shape index: {1}]   ;;  %s2621_s9 = inlined_call_operand.hbm [shape: f32[3,16,128], index: 9, kind: output, shape index: {2}]   ;;  %s2622_s10 = inlined_call_operand.hbm [shape: f32[3,16,128], index: 10, kind: output, shape index: {3}]   ;;  %s2623_s11 = inlined_call_operand.hbm [shape: f32[3,8,128], index: 11, kind: output, shape index: {4}]  }
   0x1   :  { %2642 = sst [smem:[#allocation31_spill]] %s2613_s1 }
   0x2   :  { %2643 = sst [smem:[#allocation32_spill]] %s2617_s5 }
   0x3   :  { %2644 = sst [smem:[#allocation33_spill]] %s2619_s7 }
   0x4   :  { %2645 = sst [smem:[#allocation34_spill]] %s2621_s9 }
   0x5   :  { %2646 = sst [smem:[#allocation35_spill]] %s2622_s10 }
   0x6   :  { %2647 = sst [smem:[#allocation36_spill]] %s2623_s11 }
   0x7   :  { %17 = vsyncpa [#allocation6], 0 }
   0x8   :  { %18 = vsyncpa [#allocation9], 0 }
   0x9   :  { %19 = vsyncpa [#allocation12], 0 }
   0xa   :  { %21 = vsyncpa [#allocation12 + $0x1], 0 }
   0xb   :  { %22 = vsyncpa [#allocation7], 0 }
   0xc   :  { %23 = vsyncpa [#allocation16], 0 }
   0xd   :  { %25 = vsyncpa [#allocation16 + $0x1], 0 }
   0xe   :  { %26 = vsyncpa [#allocation19], 0 }
   0xf   :  { %28 = vsyncpa [#allocation19 + $0x1], 0  ;;  %s2131_s17 = smov 0   ;;  %s2133_s18 = smov 0  }
  0x10   :  { %s2135_s19 = smov 0   ;;  %s2137_s20 = smov 0  }
  0x11 LB: > { %2648 = sst [smem:[#allocation27_spill]] %s2044_s19  ;;  %s2150_s21 = sadd.s32 4294967295, %s2048_s20   ;;  %s2048_s20 = sphi %s2137_s20, %s2686_s20   ;;  %s2044_s19 = sphi %s2135_s19, %s2688_s19   ;;  %s2040_s18 = sphi %s2133_s18, %s2690_s18   ;;  %s2036_s17 = sphi %s2131_s17, %s2689_s17  }
  0x12   : > { %s2624_s22 = sadd.s32 4294967294, %s2048_s20   ;;  %p159_p0 = scmp.ne.s32.totalorder %s2040_s18, %s2036_s17 }
  0x13   : > { %p2633_p1 = scmp.eq.s32.totalorder %s2150_s21, 0  ;;  %p2631_p2 = scmp.eq.s32.totalorder %s2150_s21, 2 }
  0x14   : > { %p236_p3 = scmp.eq.s32.totalorder %s2624_s22, 2  ;;  %p1413_p5 = scmp.ge.s32.totalorder %s2048_s20, 1 }
  0x15   : > { %p2160_p4 = por %p2633_p1, %p159_p0  ;;  %p321_p7 = scmp.lt.s32.totalorder %s2048_s20, 4 }
  0x16   : > { %p2165_p6 = por %p236_p3, %p159_p0  ;;  %s2050_s26 = smov [#allocation8]  }
  0x17   : > { %s2649_s23 = scalar_select %p2160_p4, 1, 0 }
  0x18   : > { %s2650_s24 = scalar_select %p2165_p6, 1, 0 }
  0x19   : > { %p2171_p9 = pnand %p1413_p5, %p321_p7  ;;  %s344_s27 = sshll.u32 %s2050_s26, 4  ;;  %s345_s27 = int_to_ptr.vmem [resolvable:$true] %s344_s27 }
  0x1a   : > { %2651 = sst [smem:[#allocation28_spill]] %s2650_s24  ;;  %s2184_s29 = sadd.s32 1, %s2048_s20  }
  0x1b   : > { %s2652_s25 = scalar_select %p2171_p9, 1, 0 }
  0x1c   : > { %p1587_p10 = pneg %p2171_p9  ;;  %2654 = sst [smem:[#allocation29_spill]] %s2184_s29 }
  0x1d   : > { %s146_s30 = sadd.s32 1, %s2044_s19  ;;  %s143_s12 = ssub.s32 %s2048_s20, %s2184_s29 }
  0x1e   : > { %p2179_p11 = pnand %p1587_p10, %p2633_p1  ;;  %s1743_s13 = scalar_lea.vmem %s345_s27, 1024 }
  0x1f   : > { %p1744_p13 = scmp.ne.s32.totalorder %s345_s27, %s1743_s13  ;;  %p1751_p5 = scmp.lt.s32.totalorder %s345_s27, %s345_s27 }
  0x20   : > { %p2634_p12 = pneg %p2179_p11  ;;  %p1752_p7 = scmp.lt.s32.totalorder %s1743_s13, %s1743_s13 }
  0x22   : > { %p1746_p0 = pnand %p1744_p13, %p2634_p12  ;;  %p1753_p10 = por %p1752_p7, %p1751_p5 }
  0x24   : > { %p1747_p3 = pneg %p1746_p0 }
  0x26   : > { %p1754_p8 = pnand %p1753_p10, %p1747_p3 }
  0x28   : > { %1757 = shalt.err (!%p1754_p8)
}
  0x29   : > { %s2629_s14 = smov 64   ;;  %s2630_s15 = smov 4  }
  0x2a   : > { %s2655_s1 = sld [smem:[#allocation31_spill]]  ;;  %p144_p8 = scmp.eq.s32.totalorder %s143_s12, 0 }
  0x2b   : > { %p153_p13 = scmp.ne.s32.totalorder %s2044_s19, %s2040_s18  ;;  %p154_p0 = scmp.eq.s32.totalorder %s2048_s20, 0 }
  0x2c   : > { %p1620_p3 = scmp.lt.s32.totalorder %s2048_s20, 3  ;;  %s377_s22 = sand.u32 1, %s2048_s20  }
  0x2d   : > { %s2207_s26 = scalar_select %p144_p8, %s2044_s19, %s146_s30  }
  0x2e   : > { %p155_p5 = por %p154_p0, %p153_p13  ;;  %p2211_p7 = por %p2631_p2, %p153_p13 }
  0x2f   : > { %2656 = sst [smem:[#allocation30_spill]] %s2207_s26  ;;  %s379_s29 = sand.u32 1, %s2044_s19  }
  0x30   : > { %1593 = dma.hbm_to_vmem [thread:$0]  (!%p2179_p11), %s2655_s1, 1024, %s345_s27, [#allocation9], %s2629_s14, %s2629_s14, %s2630_s15  }
  0x31   : > { %s2657_s13 = scalar_select %p2211_p7, 1, 0 }
  0x32   : > { %s2217_s24 = sshll.u32 %s379_s29, 4  ;;  %s2632_s11 = sshll.u32 %s2048_s20, 8 }
  0x33   : > { %s2658_s5 = sld [smem:[#allocation32_spill]]  ;;  %s381_s30 = scalar_lea.vmem [#allocation11], %s2217_s24 }
  0x34   : > { %s388_s17 = sshll.u32 %s381_s30, 4  ;;  %p2230_p10 = pnand %p1620_p3, %p155_p5  ;;  %s2228_s17 = int_to_ptr.vmem [resolvable:$true] %s388_s17 }
  0x35   : > { %s2234_s29 = scalar_lea.sflag [#allocation12], %s377_s22 }
  0x36   : > { %p2641_p13 = pneg %p2230_p10 }
  0x39   : > { %s2225_s16 = scalar_lea.hbm %s2658_s5, %s2632_s11  ;;  %s1763_s30 = scalar_lea.hbm %s2658_s5, 768 }
  0x3a   : > { %s1758_s15 = scalar_lea.hbm %s2225_s16, 256  ;;  %p1764_p3 = scmp.lt.s32.totalorder %s2225_s16, %s2658_s5 }
  0x3b   : > { %p1759_p8 = scmp.ne.s32.totalorder %s2225_s16, %s1758_s15  ;;  %p1765_p5 = scmp.lt.s32.totalorder %s1763_s30, %s1758_s15 }
  0x3d   : > { %p1761_p0 = pnand %p2641_p13, %p1759_p8  ;;  %p1766_p1 = por %p1765_p5, %p1764_p3 }
  0x3f   : > { %p1762_p2 = pneg %p1761_p0 }
  0x41   : > { %p1767_p12 = pnand %p1766_p1, %p1762_p2 }
  0x43   : > { %1770 = shalt.err (!%p1767_p12)
}
  0x44   : > { %s1771_s22 = scalar_lea.vmem %s2228_s17, 256  ;;  %s2053_s27 = smov [#allocation11]  }
  0x45   : > { %p1772_p6 = scmp.ne.s32.totalorder %s2228_s17, %s1771_s22  ;;  %s1776_s12 = sshll.u32 %s2053_s27, 4  ;;  %s1777_s12 = int_to_ptr.vmem [resolvable:$false] %s1776_s12 }
  0x46   : > { %s1778_s26 = scalar_lea.vmem %s1777_s12, 512  ;;  %p1779_p7 = scmp.lt.s32.totalorder %s2228_s17, %s1777_s12 }
  0x47   : > { %p1774_p8 = pnand %p1772_p6, %p2641_p13  ;;  %p1780_p4 = scmp.lt.s32.totalorder %s1778_s26, %s1771_s22 }
  0x49   : > { %p1775_p0 = pneg %p1774_p8  ;;  %p1781_p9 = por %p1780_p4, %p1779_p7 }
  0x4b   : > { %p1782_p3 = pnand %p1781_p9, %p1775_p0 }
  0x4d   : > { %1785 = shalt.err (!%p1782_p3)
}
  0x4e   : > { %s2054_s1 = smov 128   ;;  %s2055_s11 = smov 8  }
  0x4f   : > { %1600 = dma.hbm_to_vmem [thread:$0]  (!%p2230_p10), %s2225_s16, 256, %s2228_s17, %s2234_s29, %s2054_s1, %s2054_s1, %s2055_s11  }
  0x50   : > { %s2660_s15 = sshll.u32 %s2048_s20, 8  ;;  %s402_s27 = scalar_lea.vmem [#allocation13], %s2217_s24 }
  0x51   : > { %s2269_s22 = scalar_lea.hbm %s2618_s6, %s2660_s15  ;;  %s409_s12 = sshll.u32 %s402_s27, 4  ;;  %s2272_s12 = int_to_ptr.vmem [resolvable:$true] %s409_s12 }
  0x52   : > { %s2056_s5 = smov [#allocation5]   ;;  %s2057_s7 = smov [#allocation10]  }
  0x53   : > { %s334_s19 = sshll.u32 %s2056_s5, 4  ;;  %s357_s9 = sshll.u32 %s2057_s7, 4  ;;  %s335_s19 = int_to_ptr.vmem [resolvable:$true] %s334_s19  ;;  %s358_s9 = int_to_ptr.vmem [resolvable:$true] %s357_s9 }
  0x54   : > { %s1797_s10 = scalar_lea.vmem %s335_s19, 16  ;;  %p2661_p2 = pneg %p2179_p11 }
  0x55   : > { %p1798_p1 = scmp.ne.s32.totalorder %s335_s19, %s1797_s10  ;;  %s1804_s16 = scalar_lea.vmem %s335_s19, 32 }
  0x56   : > { %p1805_p9 = scmp.lt.s32.totalorder %s335_s19, %s335_s19  ;;  %p1806_p12 = scmp.lt.s32.totalorder %s1804_s16, %s1797_s10 }
  0x57   : > { %p1800_p4 = pnand %p1798_p1, %p2661_p2 }
  0x58   : > { %p1807_p7 = por %p1806_p12, %p1805_p9 }
  0x59   : > { %p1801_p6 = pneg %p1800_p4 }
  0x5b   : > { %p1808_p5 = pnand %p1807_p7, %p1801_p6 }
  0x5d   : > { %1811 = shalt.err (!%p1808_p5)
}
  0x5e   : > { %1590 = dma.hbm_to_vmem [thread:$0]  (!%p2179_p11), %s2612_s0, 16, %s335_s19, [#allocation6]  }
  0x5f   : > { %s1823_s5 = scalar_lea.vmem %s358_s9, 1024  ;;  %p2662_p0 = pmov %p2661_p2 }
  0x60   : > { %p1824_p8 = scmp.ne.s32.totalorder %s358_s9, %s1823_s5  ;;  %p1831_p2 = scmp.lt.s32.totalorder %s358_s9, %s358_s9 }
  0x61   : > { %p1832_p4 = scmp.lt.s32.totalorder %s1823_s5, %s1823_s5 }
  0x62   : > { %p1826_p3 = pnand %p1824_p8, %p2662_p0 }
  0x63   : > { %p1833_p13 = por %p1832_p4, %p1831_p2 }
  0x64   : > { %p1827_p1 = pneg %p1826_p3 }
  0x66   : > { %p1834_p9 = pnand %p1833_p13, %p1827_p1 }
  0x68   : > { %1837 = shalt.err (!%p1834_p9)
}
  0x69   : > { %s2663_s7 = smov 4   ;;  %s2664_s10 = smov 64  }
  0x6a   : > { %1596 = dma.hbm_to_vmem [thread:$0]  (!%p2179_p11), %s2614_s2, 1024, %s358_s9, [#allocation9], %s2664_s10, %s2664_s10, %s2663_s7  }
  0x6b   : > { %s1838_s19 = scalar_lea.hbm %s2269_s22, 256  ;;  %p2665_p12 = pneg %p2230_p10 }
  0x6c   : > { %p1839_p6 = scmp.ne.s32.totalorder %s2269_s22, %s1838_s19  ;;  %s1843_s28 = scalar_lea.hbm %s2618_s6, 768 }
  0x6d   : > { %p1844_p5 = scmp.lt.s32.totalorder %s2269_s22, %s2618_s6  ;;  %p1845_p8 = scmp.lt.s32.totalorder %s1843_s28, %s1838_s19 }
  0x6e   : > { %p1841_p7 = pnand %p1839_p6, %p2665_p12 }
  0x6f   : > { %p1846_p0 = por %p1845_p8, %p1844_p5 }
  0x70   : > { %p1842_p13 = pneg %p1841_p7 }
  0x72   : > { %p1847_p3 = pnand %p1846_p0, %p1842_p13 }
  0x74   : > { %1850 = shalt.err (!%p1847_p3)
}
  0x75   : > { %s1851_s9 = scalar_lea.vmem %s2272_s12, 256  ;;  %p2666_p1 = pmov %p2665_p12 }
  0x76   : > { %p1852_p11 = scmp.ne.s32.totalorder %s2272_s12, %s1851_s9  ;;  %s2058_s17 = smov [#allocation13]  }
  0x77   : > { %s1856_s5 = sshll.u32 %s2058_s17, 4  ;;  %s1857_s5 = int_to_ptr.vmem [resolvable:$false] %s1856_s5 }
  0x78   : > { %p1854_p2 = pnand %p1852_p11, %p2666_p1  ;;  %s1858_s7 = scalar_lea.vmem %s1857_s5, 512 }
  0x79   : > { %p1859_p9 = scmp.lt.s32.totalorder %s2272_s12, %s1857_s5  ;;  %p1860_p6 = scmp.lt.s32.totalorder %s1858_s7, %s1851_s9 }
  0x7a   : > { %p1855_p4 = pneg %p1854_p2 }
  0x7b   : > { %p1861_p12 = por %p1860_p6, %p1859_p9 }
  0x7d   : > { %p1862_p7 = pnand %p1861_p12, %p1855_p4 }
  0x7f   : > { %1865 = shalt.err (!%p1862_p7)
}
  0x80   : > { %1603 = dma.hbm_to_vmem [thread:$0]  (!%p2230_p10), %s2269_s22, 256, %s2272_s12, %s2234_s29, %s2054_s1, %s2054_s1, %s2055_s11  }
  0x81   : > { %p2667_p13 = scmp.ne.s32.totalorder %s2652_s25, 0 }
  0x82   : > { %p2668_p5 = scmp.eq.s32.totalorder (!%p2667_p13), %s2150_s21, 0 }
  0x83   : > { %421 = sbr.rel (%p2667_p13) target bundleno = 1085 (0x43d), region = 48 }
  0x88   : > { %2011 = dma.done.wait (%p2668_p5), [#allocation6], 16   ;;  %p2669_p8 = pmov %p2668_p5 }
  0x89   : > { %p2670_p0 = pmov %p2668_p5 }
  0x8a   : > { %2013 = vsyncadd (%p2669_p8), [#allocation6], 4294967280 }
  0x8b   : > { %2015 = dma.done.wait (%p2670_p0), [#allocation9], 2048   ;;  %p2671_p3 = pmov %p2670_p0 }
  0x8c   : > { %s2330_s14 = sand.u32 1, %s2150_s21   ;;  %s437_s25 = sand.u32 1, %s2040_s18  }
  0x8d   : > { %2017 = vsyncadd (%p2671_p3), [#allocation9], 4294965248  ;;  %s2333_s29 = sshll.u32 %s437_s25, 4  ;;  %s436_s1 = scalar_lea.sflag [#allocation12], %s2330_s14 }
  0x8e   : > { %s439_s11 = scalar_lea.vmem [#allocation11], %s2333_s29  ;;  %p2672_p10 = scmp.ne.s32.totalorder %s2649_s23, 0 }
  0x90   : > { %2019 = dma.done.wait (%p2672_p10), %s436_s1, 512  }
  0x91   : > { %2021 = vsyncadd (%p2672_p10), %s436_s1, 4294966784  ;;  %v508_v0 = vlaneseq  ;;  %s2341_s22 = sshll.u32 %s437_s25, 3  ;;  %v2059_v2 = vmov 0.0   ;;  %s448_s12 = scalar_lea.vmem [#allocation13], %s2333_s29 }
  0x92   : > { %s2352_s23 = scalar_lea.vmem [#allocation15], %s2333_s29  ;;  %s2355_s10 = scalar_lea.vmem [#allocation17], %s2333_s29 }
  0x93   : > { %v2344_v1 = vand.u32 127, %v508_v0  ;;  %s2358_s15 = scalar_lea.vmem [#allocation18], %s2333_s29  ;;  %s506_s30 = scalar_lea.vmem [#allocation20], %s2341_s22 }
  0x94   : > { %p2673_p11 = scmp.ne.s32.totalorder %s2150_s21, 0 }
  0x95   : > { %vm510_vm0 = vcmp.lt.s32.totalorder %v2344_v1, 32 }
  0x96   : > { %v2348_v3 = vsel %vm510_vm0, 1.0, %v2059_v2  ;;  %516 = sbr.rel (%p2673_p11) target bundleno = 575 (0x23f), region = 72 }
  0x9b   : > { %v1674_v4 = vld [vmem:[#allocation8 + $0x38] sm:$0xff]   ;;  %v2060_v5 = vmov 0.0   ;;  %v1675_v6 = vld [vmem:[#allocation8 + $0x30] sm:$0xff]   ;;  %vm2061_vm1 = vmmov 0   ;;  %v1676_v7 = vld [vmem:[#allocation8 + $0x28] sm:$0xff]   ;;  %v695_v55 = vshrl.u32 %v508_v0, 7 }
  0x9c   : > { %1513 = vmatprep.subr.bf16.mxu0 %v2060_v5  ;;  %1529 = vmatprep.mubr.msk.bf16.mxu0 %vm2061_vm1, %v2060_v5  ;;  %v1677_v8 = vld [vmem:[#allocation8 + $0x20] sm:$0xff]   ;;  %v1678_v9 = vld [vmem:[#allocation8 + $0x18] sm:$0xff]   ;;  %v1679_v10 = vld [vmem:[#allocation8 + $0x10] sm:$0xff]   ;;  %vm517_vm5 = vcmp.lt.s32.totalorder %v2344_v1, 16  ;;  %vm711_vm7 = vcmask 1041408   ;;  %vm715_vm8 = vcmask 1024  }
  0x9d   : > { %1514 = vmatpush3.bf16.msra.mxu0 %v1674_v4  ;;  %v1680_v11 = vld [vmem:[#allocation8 + $0x8] sm:$0xff]   ;;  %v1681_v12 = vld [vmem:[#allocation8] sm:$0xff]   ;;  %v520_v13 = vld [vmem:[#allocation5] sm:$0x1]  ;;  %v696_v62 = vsub.s32 0, %v695_v55 }
  0x9e   : > { %1515 = vmatprep.subr.bf16.mxu0 %v2060_v5  ;;  %v669_v14 = vld [vmem:[%s2616_s4] sm:$0x1] }
  0x9f   : > { %v1449_v15 = vclamps-f32 %v669_v14, 13.81551  ;;  %v1437_v20 = vld [vmem:[%s2616_s4] ss:$0 sm:$0xff] }
  0xa1   : > { %1516 = vmatpush3.bf16.msra.mxu0 %v1675_v6  ;;  %v2375_v16 = vsub.f32 0.0, %v1449_v15 }
  0xa2   : > { %1517 = vmatprep.subr.bf16.mxu0 %v2060_v5 }
  0xa3   : > { %v676_v17 = vand.u32 2147483647, %v2375_v16  ;;  %v673_v47 = vmax.f32 %v2375_v16, 0.0  ;;  %vm674_vm3 = vcmp.ne.f32.partialorder %v2375_v16, %v2375_v16 }
  0xa5   : > { %1518 = vmatpush3.bf16.msra.mxu0 %v1676_v7  ;;  %v677_v18 = vsub.f32 0.0, %v676_v17 }
  0xa6   : > { %1519 = vmatprep.subr.bf16.mxu0 %v2060_v5 }
  0xa7   : > { %v678_v19 = vmul.f32 1.442695, %v677_v18 }
  0xa9   : > { %1520 = vmatpush3.bf16.msra.mxu0 %v1677_v8  ;;  %1682 = vpow2.f32 %v678_v19 }
  0xaa   : > { %1521 = vmatprep.subr.bf16.mxu0 %v2060_v5 }
  0xad   : > { %1522 = vmatpush3.bf16.msra.mxu0 %v1678_v9 }
  0xae   : > { %1523 = vmatprep.subr.bf16.mxu0 %v2060_v5 }
  0xb1   : > { %1524 = vmatpush3.bf16.msra.mxu0 %v1679_v10 }
  0xb2   : > { %1525 = vmatprep.subr.bf16.mxu0 %v2060_v5 }
  0xb5   : > { %1526 = vmatpush3.bf16.msra.mxu0 %v1680_v11 }
  0xb6   : > { %1527 = vmatprep.subr.bf16.mxu0 %v2060_v5  ;;  %v1683_v27 = vpop.eup %1682 }
  0xb7   : > { %v680_v32 = vadd.f32 1.0, %v1683_v27  ;;  %v683_v38 = vmul.f32 -0.5, %v1683_v27  ;;  %v686_v42 = vand.u32 2147483647, %v1683_v27 }
  0xb9   : > { %1528 = vmatpush3.bf16.msra.mxu0 %v1681_v12  ;;  %v684_v40 = vadd.f32 1.0, %v683_v38  ;;  %vm687_vm2 = vcmp.lt.f32.partialorder %v686_v42, 0.0004427343  ;;  %v1436_v12 = vsel %vm517_vm5, 1.0, %v2060_v5 }
  0xbb   : > { %v685_v46 = vmul.f32 %v1683_v27, %v684_v40 }
  0xbc   : > { %1530 = vmatmul.mubr.bf16.vlgmr.msra.gmra.mxu0 %v520_v13 }
 0x17c   : > { %v626_v21 = vpop.f32.mrf.mxu0 }
 0x17d   : > { %v627_v22 = vadd.f32 %v1437_v20, %v626_v21 }
 0x17e   : > { %v1531_v23 = vpop.f32.mrf.mxu0 }
 0x17f   : > { %v1446_v24 = vmul.f32 -1.442695, %v627_v22  ;;  %v1447_v25 = vclamps-f32 %v627_v22, 13.81551 }
 0x180   : > { %v629_v26 = vpop.f32.mrf.mxu0 }
 0x181   : > { %1684 = vpow2.f32 %v1446_v24  ;;  %v1448_v28 = vmul.f32 -1.442695, %v1447_v25  ;;  %v648_v29 = vsub.f32 0.0, %v1447_v25 }
 0x182   : > { %v1532_v30 = vpop.f32.mrf.mxu0 }
 0x183   : > { %1686 = vpow2.f32 %v1448_v28  ;;  %v652_v31 = vand.u32 2147483647, %v648_v29  ;;  %v649_v63 = vmax.f32 %v648_v29, 0.0  ;;  %vm650_vm6 = vcmp.ne.f32.partialorder %v648_v29, %v648_v29 }
 0x184   : > { %1688 = vlog2.f32 %v680_v32 }
 0x185   : > { %v653_v33 = vsub.f32 0.0, %v652_v31 }
 0x187   : > { %v654_v34 = vmul.f32 1.442695, %v653_v33 }
 0x189   : > { %1690 = vpow2.f32 %v654_v34 }
 0x18e   : > { %v1685_v35 = vpop.eup %1684 }
 0x18f   : > { %v635_v36 = vadd.f32 1.0, %v1685_v35 }
 0x190   : > { %v1687_v37 = vpop.eup %1686 }
 0x191   : > { %1692 = vrcp.f32 %v635_v36  ;;  %v644_v39 = vadd.f32 1.0, %v1687_v37  ;;  %v1689_v41 = vpop.eup %1688 }
 0x192   : > { %v682_v45 = vmul.f32 0.6931472, %v1689_v41 }
 0x193   : > { %1694 = vrcp.f32 %v644_v39 }
 0x194   : > { %v688_v48 = vsel %vm687_vm2, %v685_v46, %v682_v45 }
 0x195   : > { %v689_v51 = vadd.f32 %v688_v48, %v673_v47 }
 0x196   : > { %v1691_v43 = vpop.eup %1690 }
 0x197   : > { %v656_v44 = vadd.f32 1.0, %v1691_v43  ;;  %v659_v50 = vmul.f32 -0.5, %v1691_v43  ;;  %v690_v54 = vsel %vm674_vm3, %v2375_v16, %v689_v51  ;;  %v662_v56 = vand.u32 2147483647, %v1691_v43 }
 0x198   : > { %v691_v58 = vsub.f32 0.0, %v690_v54  ;;  %v692_v61 = vsub.f32 %v2375_v16, %v690_v54 }
 0x199   : > { %1696 = vlog2.f32 %v656_v44  ;;  %v660_v53 = vadd.f32 1.0, %v659_v50  ;;  %vm663_vm4 = vcmp.lt.f32.partialorder %v662_v56, 0.0004427343 }
 0x19a   : > { %v697_v7 = vrot.slane %v691_v58, %v696_v62  ;;  %v704_v8 = vrot.slane %v692_v61, %v696_v62 }
 0x19b   : > { %v661_v60 = vmul.f32 %v1691_v43, %v660_v53 }
 0x19e   : > { %v1693_v49 = vpop.eup %1692 }
 0x19f   : > { %638 = vst [vmem:[#allocation14] sm:$0x3] %v1693_v49 }
 0x1a0   : > { %v1695_v52 = vpop.eup %1694 }
 0x1a1   : > { %647 = vst [vmem:[#allocation2] sm:$0x3] %v1695_v52 }
 0x1a6   : > { %v1697_v57 = vpop.eup %1696 }
 0x1a7   : > { %v658_v59 = vmul.f32 0.6931472, %v1697_v57 }
 0x1a9   : > { %v664_v4 = vsel %vm663_vm4, %v661_v60, %v658_v59 }
 0x1aa   : > { %v665_v6 = vadd.f32 %v664_v4, %v649_v63 }
 0x1ac   : > { %v666_v9 = vsel %vm650_vm6, %v648_v29, %v665_v6 }
 0x1ad   : > { %v667_v10 = vsub.f32 0.0, %v666_v9  ;;  %v668_v11 = vsub.f32 %v648_v29, %v666_v9 }
 0x1af   : > { %v699_v13 = vsub.f32 %v697_v7, %v667_v10  ;;  %v706_v14 = vsub.f32 %v704_v8, %v668_v11 }
 0x1b1   : > { %v707_v15 = vsub.f32 %v699_v13, %v706_v14  ;;  %v708_v16 = vmul.f32 %v1436_v12, %v706_v14 }
 0x1b3   : > { %v709_v17 = vmul.f32 %v1436_v12, %v707_v15  ;;  %v712_v18 = vsel %vm711_vm7, %v708_v16, 0.0 }
 0x1b4   : > { %713 = vadd.xlane.f32.xlu0 %v712_v18 }
 0x1b5   : > { %710 = vst [vmem:[#allocation3] sm:$0x3] %v709_v17 }
 0x23d   : > { %v714_v19 = vpop.xlane.xlu0 %713 }
 0x23e   : > { %716 = vst.msk [vmem:[#allocation4] sm:$0x3] %vm715_vm8, %v714_v19 }
 0x23f PF: > { %1533 = vmatprep.subr.bf16.mxu0 %v2059_v2  ;;  %v1698_v1 = vld [vmem:[#allocation10 + $0x38] sm:$0xff]   ;;  %vm2062_vm9 = vmmov 0   ;;  %v1699_v5 = vld [vmem:[#allocation10 + $0x30] sm:$0xff]   ;;  %v1700_v20 = vld [vmem:[#allocation10 + $0x28] sm:$0xff]   ;;  %v2063_v23 = vmov 1983009808  }
 0x240   : > { %1549 = vmatprep.mubr.msk.bf16.mxu0 %vm2062_vm9, %v2059_v2  ;;  %1534 = vmatpush3.bf16.msra.mxu0 %v1698_v1  ;;  %v718_v21 = vld [vmem:[%s439_s11] sm:$0xff]  ;;  %v719_v22 = vld [vmem:[%s439_s11 + $0x8] sm:$0xff]  ;;  %v724_v24 = vunpack.c.l.s4 %v2063_v23  ;;  %v727_v25 = vshrl.u32 %v508_v0, 7  ;;  %vm1044_vm2 = vcmask 1041408   ;;  %vm1070_vm3 = vcmask 1024   ;;  %s2461_s9 = sshll.u32 %s2150_s21, 8 }
 0x241   : > { %1535 = vmatprep.subr.bf16.mxu0 %v2059_v2  ;;  %v1701_v26 = vld [vmem:[#allocation10 + $0x20] sm:$0xff]   ;;  %v722_v27 = vcombine.high %v718_v21, %v718_v21  ;;  %v739_v29 = vcombine.high %v719_v22, %v719_v22  ;;  %v1702_v31 = vld [vmem:[#allocation10 + $0x18] sm:$0xff]   ;;  %v1703_v40 = vld [vmem:[#allocation10 + $0x10] sm:$0xff]   ;;  %s1140_s17 = sshll.u32 %s2352_s23, 4  ;;  %s2468_s25 = scalar_lea.hbm %s2620_s8, %s2461_s9  ;;  %s2470_s17 = int_to_ptr.vmem [resolvable:$true] %s1140_s17 }
 0x242   : > { %v725_v28 = vunpack.c.0.s8 %v724_v24  ;;  %v717_v32 = vld [vmem:[#allocation2] sm:$0x3]  ;;  %v1704_v49 = vld [vmem:[#allocation10 + $0x8] sm:$0xff]   ;;  %v1705_v58 = vld [vmem:[#allocation10] sm:$0xff]   ;;  %s1101_s29 = scalar_lea.sflag [#allocation16], %s2330_s14  ;;  %s1866_s1 = scalar_lea.vmem %s2470_s17, 256 }
 0x243   : > { %v1035_v62 = vld [vmem:[#allocation3] sm:$0x3]  ;;  %p1867_p1 = scmp.ne.s32.totalorder %s2470_s17, %s1866_s1  ;;  %p2674_p2 = scmp.ne.s32.totalorder %s2657_s13, 0 }
 0x244   : > { %1536 = vmatpush3.bf16.msra.mxu0 %v1699_v5  ;;  %v728_v30 = vsub.s32 %v725_v28, %v727_v25  ;;  %s2064_s11 = smov [#allocation15]  }
 0x245   : > { %1537 = vmatprep.subr.bf16.mxu0 %v2059_v2  ;;  %v1069_v25 = vld [vmem:[#allocation4] sm:$0x3]  ;;  %p1868_p4 = pnand %p1867_p1, %p2674_p2 }
 0x246   : > { %v729_v33 = vrot.slane %v718_v21, %v728_v30  ;;  %v736_v34 = vrot.slane %v722_v27, %v728_v30  ;;  %v746_v35 = vrot.slane %v719_v22, %v728_v30  ;;  %v753_v36 = vrot.slane %v739_v29, %v728_v30  ;;  %v1458_v27 = vld [vmem:[%s2615_s3] ss:$0 sm:$0xff] }
 0x247   : > { %p1869_p9 = pneg %p1868_p4 }
 0x248   : > { %1538 = vmatpush3.bf16.msra.mxu0 %v1700_v20  ;;  %v737_v37 = vcombine.high %v729_v33, %v729_v33  ;;  %v738_v38 = vcombine.high %v736_v34, %v736_v34  ;;  %v754_v0 = vcombine.high %v746_v35, %v746_v35  ;;  %v755_v39 = vcombine.high %v753_v36, %v753_v36 }
 0x249   : > { %1539 = vmatprep.subr.bf16.mxu0 %v2059_v2  ;;  %vm764_vm10 = vcmp.lt.f32.partialorder %v729_v33, %v717_v32  ;;  %vm766_vm11 = vcmp.lt.f32.partialorder %v736_v34, %v717_v32  ;;  %vm768_vm12 = vcmp.lt.f32.partialorder %v746_v35, %v717_v32  ;;  %vm770_vm13 = vcmp.lt.f32.partialorder %v753_v36, %v717_v32 }
 0x24a   : > { %vm765_vm14 = vcmp.lt.f32.partialorder %v737_v37, %v717_v32  ;;  %vm767_vm15 = vcmp.lt.f32.partialorder %v738_v38, %v717_v32  ;;  %vm769_vm0 = vcmp.lt.f32.partialorder %v754_v0, %v717_v32  ;;  %vm771_vm1 = vcmp.lt.f32.partialorder %v755_v39, %v717_v32 }
 0x24b   : > { %v1450_v41 = vsel %vm764_vm10, 1.0, %v2059_v2  ;;  %v1451_v42 = vsel %vm765_vm14, 1.0, %v2059_v2  ;;  %v1452_v43 = vsel %vm766_vm11, 1.0, %v2059_v2  ;;  %v1453_v44 = vsel %vm767_vm15, 1.0, %v2059_v2 }
 0x24c   : > { %1540 = vmatpush3.bf16.msra.mxu0 %v1701_v26  ;;  %v1454_v45 = vsel %vm768_vm12, 1.0, %v2059_v2  ;;  %v1455_v46 = vsel %vm769_vm0, 1.0, %v2059_v2  ;;  %v1456_v47 = vsel %vm770_vm13, 1.0, %v2059_v2  ;;  %v1457_v48 = vsel %vm771_vm1, 1.0, %v2059_v2 }
 0x24d   : > { %1541 = vmatprep.subr.bf16.mxu0 %v2059_v2  ;;  %v796_v50 = vcombine.low %v1450_v41, %v1451_v42  ;;  %v797_v51 = vcombine.low %v1452_v43, %v1453_v44  ;;  %v813_v52 = vcombine.low %v1454_v45, %v1455_v46  ;;  %v814_v53 = vcombine.low %v1456_v47, %v1457_v48 }
 0x24e   : > { %v1036_v63 = vmul.f32 %v1450_v41, %v1035_v62  ;;  %v1037_v4 = vmul.f32 %v1451_v42, %v1035_v62  ;;  %v1038_v6 = vmul.f32 %v1452_v43, %v1035_v62  ;;  %v1039_v10 = vmul.f32 %v1453_v44, %v1035_v62 }
 0x24f   : > { %v804_v54 = vrot.slane %v796_v50, %v728_v30  ;;  %v811_v55 = vrot.slane %v797_v51, %v728_v30  ;;  %v821_v56 = vrot.slane %v813_v52, %v728_v30  ;;  %v828_v57 = vrot.slane %v814_v53, %v728_v30 }
 0x250   : > { %1542 = vmatpush3.bf16.msra.mxu0 %v1702_v31  ;;  %v1045_v7 = vsel %vm1044_vm2, %v1036_v63, 0.0  ;;  %v1046_v8 = vsel %vm1044_vm2, %v1037_v4, 0.0  ;;  %v1048_v11 = vsel %vm1044_vm2, %v1038_v6, 0.0  ;;  %v1040_v13 = vmul.f32 %v1454_v45, %v1035_v62  ;;  %v978_v4 = vld [vmem:[%s448_s12 + $0x8] sm:$0xff] }
 0x251   : > { %1543 = vmatprep.subr.bf16.mxu0 %v2059_v2  ;;  %v812_v59 = vcombine.low %v804_v54, %v811_v55  ;;  %v829_v60 = vcombine.low %v821_v56, %v828_v57  ;;  %v1047_v9 = vadd.f32 %v1046_v8, %v1045_v7  ;;  %v1050_v14 = vsel %vm1044_vm2, %v1039_v10, 0.0 }
 0x252   : > { %v1041_v16 = vmul.f32 %v1455_v46, %v1035_v62  ;;  %v1052_v17 = vsel %vm1044_vm2, %v1040_v13, 0.0  ;;  %v1042_v19 = vmul.f32 %v1456_v47, %v1035_v62  ;;  %v1043_v20 = vmul.f32 %v1457_v48, %v1035_v62 }
 0x253   : > { %832 = vst [vmem:[%s2352_s23] sm:$0xff] %v812_v59  ;;  %833 = vst [vmem:[%s2352_s23 + $0x8] sm:$0xff] %v829_v60  ;;  %v834_v61 = vpack.c.bf16 %v829_v60, %v812_v59  ;;  %v1049_v12 = vadd.f32 %v1048_v11, %v1047_v9  ;;  %v1071_v26 = vsel %vm1070_vm3, %v1069_v25, 0.0  ;;  %v977_v60 = vld [vmem:[%s448_s12] sm:$0xff]  ;;  %s1870_s12 = sshll.u32 %s2064_s11, 4  ;;  %s1871_s12 = int_to_ptr.vmem [resolvable:$false] %s1870_s12 }
 0x254   : > { %1544 = vmatpush3.bf16.msra.mxu0 %v1703_v40  ;;  %v1054_v1 = vsel %vm1044_vm2, %v1041_v16, 0.0  ;;  %v1056_v21 = vsel %vm1044_vm2, %v1042_v19, 0.0  ;;  %v1058_v23 = vsel %vm1044_vm2, %v1043_v20, 0.0  ;;  %s1872_s23 = scalar_lea.vmem %s1871_s12, 512  ;;  %p1873_p6 = scmp.lt.s32.totalorder %s2470_s17, %s1871_s12 }
 0x255   : > { %1545 = vmatprep.subr.bf16.mxu0 %v2059_v2  ;;  %v1051_v15 = vadd.f32 %v1050_v14, %v1049_v12  ;;  %p1874_p12 = scmp.lt.s32.totalorder %s1872_s23, %s1866_s1 }
 0x257   : > { %v1053_v18 = vadd.f32 %v1052_v17, %v1051_v15  ;;  %p1875_p7 = por %p1874_p12, %p1873_p6 }
 0x258   : > { %1546 = vmatpush3.bf16.msra.mxu0 %v1704_v49 }
 0x259   : > { %1547 = vmatprep.subr.bf16.mxu0 %v2059_v2  ;;  %v1055_v5 = vadd.f32 %v1054_v1, %v1053_v18  ;;  %p1876_p13 = pnand %p1875_p7, %p1869_p9 }
 0x25b   : > { %v1057_v22 = vadd.f32 %v1056_v21, %v1055_v5 }
 0x25c   : > { %1548 = vmatpush3.bf16.msra.mxu0 %v1705_v58 }
 0x25d   : > { %v1059_v24 = vadd.f32 %v1058_v23, %v1057_v22 }
 0x25f   : > { %1550 = vmatmul.mubr.bf16.vlgmr.msra.gmra.mxu0 %v834_v61  ;;  %1060 = vadd.xlane.f32.xlu0 %v1059_v24 }
 0x263   : > { %1072 = vadd.xlane.f32.xlu0 %v1071_v26 }
 0x31f   : > { %v940_v28 = vpop.f32.mrf.mxu0 }
 0x320   : > { %v941_v29 = vadd.f32 %v1458_v27, %v940_v28 }
 0x321   : > { %v1551_v30 = vpop.f32.mrf.mxu0 }
 0x322   : > { %v1467_v31 = vmul.f32 -1.442695, %v941_v29  ;;  %v2424_v32 = vclamps-f32 %v941_v29, 13.81551 }
 0x323   : > { %v943_v33 = vpop.f32.mrf.mxu0 }
 0x324   : > { %1708 = vpow2.f32 %v1467_v31  ;;  %v1471_v34 = vmul.f32 -1.442695, %v2424_v32  ;;  %v2428_v35 = vsub.f32 0.0, %v2424_v32  ;;  %v944_v36 = vadd.f32 %v1458_v27, %v943_v33  ;;  %v1061_v27 = vpop.xlane.xlu0 %1060 }
 0x325   : > { %v1552_v37 = vpop.f32.mrf.mxu0  ;;  %v1062_v29 = vrot.slane %v1061_v27, 4 }
 0x326   : > { %1710 = vpow2.f32 %v1471_v34  ;;  %v995_v38 = vand.u32 2147483647, %v2428_v35  ;;  %v1468_v0 = vmul.f32 -1.442695, %v944_v36  ;;  %v2431_v39 = vclamps-f32 %v944_v36, 13.81551 }
 0x327   : > { %v989_v16 = vmax.f32 %v2428_v35, 0.0  ;;  %vm991_vm7 = vcmp.ne.f32.partialorder %v2428_v35, %v2428_v35  ;;  %v1063_v36 = vadd.f32 %v1062_v29, %v1061_v27 }
 0x328   : > { %v997_v40 = vsub.f32 0.0, %v995_v38  ;;  %1712 = vpow2.f32 %v1468_v0  ;;  %v1472_v41 = vmul.f32 -1.442695, %v2431_v39  ;;  %v2435_v42 = vsub.f32 0.0, %v2431_v39  ;;  %v1073_v37 = vpop.xlane.xlu0 %1072 }
 0x329   : > { %v1064_v38 = vrot.slane %v1063_v36, 2  ;;  %v1074_v0 = vrot.slane %v1073_v37, 4 }
 0x32a   : > { %v999_v43 = vmul.f32 1.442695, %v997_v40  ;;  %1714 = vpow2.f32 %v1472_v41  ;;  %v996_v44 = vand.u32 2147483647, %v2435_v42  ;;  %v990_v22 = vmax.f32 %v2435_v42, 0.0 }
 0x32b   : > { %vm992_vm9 = vcmp.ne.f32.partialorder %v2435_v42, %v2435_v42 }
 0x32c   : > { %1716 = vpow2.f32 %v999_v43  ;;  %v998_v45 = vsub.f32 0.0, %v996_v44  ;;  %v1075_v43 = vadd.f32 %v1074_v0, %v1073_v37 }
 0x32e   : > { %v1001_v46 = vmul.f32 1.442695, %v998_v45 }
 0x330   : > { %1718 = vpow2.f32 %v1001_v46 }
 0x331   : > { %v1709_v47 = vpop.eup %1708 }
 0x332   : > { %v953_v48 = vadd.f32 1.0, %v1709_v47 }
 0x333   : > { %v1711_v49 = vpop.eup %1710 }
 0x334   : > { %1720 = vrcp.f32 %v953_v48  ;;  %v971_v50 = vadd.f32 1.0, %v1711_v49 }
 0x335   : > { %v1713_v51 = vpop.eup %1712 }
 0x336   : > { %1722 = vrcp.f32 %v971_v50  ;;  %v954_v52 = vadd.f32 1.0, %v1713_v51 }
 0x337   : > { %v1715_v53 = vpop.eup %1714 }
 0x338   : > { %1724 = vrcp.f32 %v954_v52  ;;  %v972_v54 = vadd.f32 1.0, %v1715_v53 }
 0x339   : > { %v1717_v55 = vpop.eup %1716 }
 0x33a   : > { %1726 = vrcp.f32 %v972_v54  ;;  %v1003_v56 = vadd.f32 1.0, %v1717_v55  ;;  %v1006_v61 = vmul.f32 -0.5, %v1717_v55  ;;  %v1009_v10 = vand.u32 2147483647, %v1717_v55 }
 0x33c   : > { %1728 = vlog2.f32 %v1003_v56  ;;  %v1007_v7 = vadd.f32 1.0, %v1006_v61  ;;  %vm1010_vm6 = vcmp.lt.f32.partialorder %v1009_v10, 0.0004427343 }
 0x33d   : > { %v1719_v57 = vpop.eup %1718 }
 0x33e   : > { %v1012_v58 = vadd.f32 1.0, %v1719_v57  ;;  %v1015_v8 = vmul.f32 -0.5, %v1719_v57  ;;  %v1008_v14 = vmul.f32 %v1717_v55, %v1007_v7  ;;  %v1018_v17 = vand.u32 2147483647, %v1719_v57 }
 0x340   : > { %1730 = vlog2.f32 %v1012_v58  ;;  %v1016_v15 = vadd.f32 1.0, %v1015_v8  ;;  %vm1019_vm8 = vcmp.lt.f32.partialorder %v1018_v17, 0.0004427343 }
 0x341   : > { %v1721_v59 = vpop.eup %1720 }
 0x342   : > { %959 = vst [vmem:[%s2358_s15] sm:$0xff] %v1721_v59  ;;  %v1017_v20 = vmul.f32 %v1719_v57, %v1016_v15 }
 0x343   : > { %v1723_v62 = vpop.eup %1722 }
 0x344   : > { %vm979_vm4 = vcmp.lt.f32.partialorder %v977_v60, %v1723_v62 }
 0x345   : > { %v1725_v63 = vpop.eup %1724  ;;  %v1473_v6 = vsel %vm979_vm4, 1.0, %v2059_v2 }
 0x346   : > { %960 = vst [vmem:[%s2358_s15 + $0x8] sm:$0xff] %v1725_v63  ;;  %985 = vst [vmem:[%s2355_s10] sm:$0xff] %v1473_v6  ;;  %v1027_v21 = vsub.f32 1.0, %v1473_v6 }
 0x347   : > { %v1727_v9 = vpop.eup %1726 }
 0x348   : > { %vm980_vm5 = vcmp.lt.f32.partialorder %v978_v4, %v1727_v9  ;;  %v1029_v28 = vmul.f32 %v2424_v32, %v1027_v21  ;;  %v1065_v32 = vadd.f32 %v1064_v38, %v1063_v36 }
 0x349   : > { %v1729_v11 = vpop.eup %1728  ;;  %v1474_v12 = vsel %vm980_vm5, 1.0, %v2059_v2 }
 0x34a   : > { %v1005_v13 = vmul.f32 0.6931472, %v1729_v11  ;;  %986 = vst [vmem:[%s2355_s10 + $0x8] sm:$0xff] %v1474_v12  ;;  %v1028_v25 = vsub.f32 1.0, %v1474_v12  ;;  %v1066_v45 = vrot.slane %v1065_v32, 1 }
 0x34c   : > { %v1011_v18 = vsel %vm1010_vm6, %v1008_v14, %v1005_v13  ;;  %v1030_v33 = vmul.f32 %v2431_v39, %v1028_v25  ;;  %v1067_v46 = vadd.f32 %v1066_v45, %v1065_v32 }
 0x34d   : > { %v1731_v19 = vpop.eup %1730  ;;  %v1021_v1 = vadd.f32 %v1011_v18, %v989_v16 }
 0x34e   : > { %v1014_v5 = vmul.f32 0.6931472, %v1731_v19  ;;  %1553 = vpush %v1067_v46 }
 0x34f   : > { %v1023_v2 = vsel %vm991_vm7, %v2428_v35, %v1021_v1 }
 0x350   : > { %v1020_v23 = vsel %vm1019_vm8, %v1017_v20, %v1014_v5  ;;  %v1025_v24 = vsub.f32 0.0, %v1023_v2 }
 0x351   : > { %v1022_v26 = vadd.f32 %v1020_v23, %v990_v22 }
 0x352   : > { %v1031_v34 = vsub.f32 %v1025_v24, %v1029_v28 }
 0x353   : > { %v1024_v30 = vsel %vm992_vm9, %v2435_v42, %v1022_v26  ;;  %v1076_v42 = vrot.slane %v1075_v43, 2 }
 0x354   : > { %v1026_v31 = vsub.f32 0.0, %v1024_v30  ;;  %v1033_v40 = vmul.f32 %v2348_v3, %v1031_v34 }
 0x355   : > { %v1077_v39 = vadd.f32 %v1076_v42, %v1075_v43 }
 0x356   : > { %v1032_v35 = vsub.f32 %v1026_v31, %v1030_v33 }
 0x357   : > { %v1078_v47 = vrot.slane %v1077_v39, 1 }
 0x358   : > { %v1034_v41 = vmul.f32 %v2348_v3, %v1032_v35 }
 0x359   : > { %v1079_v48 = vadd.f32 %v1078_v47, %v1077_v39 }
 0x35a   : > { %v1083_v44 = vadd.f32 %v1034_v41, %v1033_v40 }
 0x35b   : > { %1555 = vpush %v1079_v48 }
 0x35c   : > { %1084 = vadd.xlane.f32.xlu1 %v1083_v44 }
 0x35d   : > { %1879 = shalt.err (!%p1876_p13)
}
 0x35e   : > { %s1880_s19 = scalar_lea.hbm %s2468_s25, 256  ;;  %s1884_s28 = scalar_lea.hbm %s2620_s8, 768 }
 0x35f   : > { %p1881_p5 = scmp.ne.s32.totalorder %s2468_s25, %s1880_s19  ;;  %p1885_p3 = scmp.lt.s32.totalorder %s2468_s25, %s2620_s8 }
 0x360   : > { %p1886_p10 = scmp.lt.s32.totalorder %s1884_s28, %s1880_s19 }
 0x361   : > { %p1882_p8 = pnand %p1881_p5, %p2674_p2 }
 0x362   : > { %p1887_p11 = por %p1886_p10, %p1885_p3 }
 0x363   : > { %p1883_p0 = pneg %p1882_p8 }
 0x365   : > { %p1888_p1 = pnand %p1887_p11, %p1883_p0 }
 0x367   : > { %1891 = shalt.err (!%p1888_p1)
}
 0x368   : > { %s2065_s5 = smov 128   ;;  %s2066_s7 = smov 8  }
 0x369   : > { %1577 = dma.vmem_to_hbm [thread:$0]  (%p2674_p2), %s2470_s17, 256, %s2468_s25, %s1101_s29, %s2065_s5, %s2065_s5, %s2066_s7  }
 0x36a   : > { %s2675_s12 = sld [smem:[#allocation35_spill]]  ;;  %s1172_s19 = sshll.u32 %s2358_s15, 4  ;;  %s2505_s19 = int_to_ptr.vmem [resolvable:$true] %s1172_s19 }
 0x36b   : > { %s1111_s26 = scalar_lea.sflag [#allocation19], %s2330_s14  ;;  %s1892_s27 = scalar_lea.vmem %s2505_s19, 256 }
 0x36c   : > { %p1893_p4 = scmp.ne.s32.totalorder %s2505_s19, %s1892_s27  ;;  %s2067_s28 = smov [#allocation18]  }
 0x36d   : > { %s1896_s16 = sshll.u32 %s2067_s28, 4  ;;  %s1897_s16 = int_to_ptr.vmem [resolvable:$false] %s1896_s16 }
 0x36e   : > { %p1894_p9 = pnand %p1893_p4, %p2674_p2  ;;  %s1898_s17 = scalar_lea.vmem %s1897_s16, 512 }
 0x36f   : > { %p1899_p12 = scmp.lt.s32.totalorder %s2505_s19, %s1897_s16  ;;  %p1900_p7 = scmp.lt.s32.totalorder %s1898_s17, %s1892_s27 }
 0x370   : > { %s2502_s23 = scalar_lea.hbm %s2675_s12, %s2461_s9  ;;  %p1895_p6 = pneg %p1894_p9 }
 0x371   : > { %p1901_p13 = por %p1900_p7, %p1899_p12 }
 0x373   : > { %p1902_p5 = pnand %p1901_p13, %p1895_p6 }
 0x375   : > { %1905 = shalt.err (!%p1902_p5)
}
 0x376   : > { %s1906_s15 = scalar_lea.hbm %s2502_s23, 256  ;;  %s1910_s1 = scalar_lea.hbm %s2675_s12, 768 }
 0x377   : > { %p1907_p8 = scmp.ne.s32.totalorder %s2502_s23, %s1906_s15  ;;  %p1911_p10 = scmp.lt.s32.totalorder %s2502_s23, %s2675_s12 }
 0x378   : > { %p1912_p11 = scmp.lt.s32.totalorder %s1910_s1, %s1906_s15 }
 0x379   : > { %p1908_p0 = pnand %p1907_p8, %p2674_p2 }
 0x37a   : > { %p1913_p1 = por %p1912_p11, %p1911_p10 }
 0x37b   : > { %p1909_p3 = pneg %p1908_p0 }
 0x37d   : > { %p1914_p4 = pnand %p1913_p1, %p1909_p3 }
 0x37f   : > { %1917 = shalt.err (!%p1914_p4)
}
 0x380   : > { %1579 = dma.vmem_to_hbm [thread:$0]  (%p2674_p2), %s2505_s19, 256, %s2502_s23, %s1111_s26, %s2065_s5, %s2065_s5, %s2066_s7  }
 0x381   : > { %s2068_s27 = smov [#allocation14]   ;;  %s2676_s25 = sld [smem:[#allocation34_spill]] }
 0x382   : > { %s1127_s16 = sshll.u32 %s2068_s27, 4  ;;  %s1156_s1 = sshll.u32 %s2355_s10, 4  ;;  %s1128_s16 = int_to_ptr.vmem [resolvable:$true] %s1127_s16  ;;  %s1157_s1 = int_to_ptr.vmem [resolvable:$true] %s1156_s1 }
 0x383   : > { %s1918_s11 = scalar_lea.vmem %s1128_s16, 32  ;;  %p2677_p6 = scmp.eq.s32.totalorder %s2150_s21, 2 }
 0x384   : > { %p1919_p9 = scmp.ne.s32.totalorder %s1128_s16, %s1918_s11  ;;  %p1925_p13 = scmp.lt.s32.totalorder %s1128_s16, %s1128_s16 }
 0x385   : > { %p1926_p5 = scmp.lt.s32.totalorder %s1918_s11, %s1918_s11 }
 0x386   : > { %p1920_p12 = pnand %p1919_p9, %p2677_p6 }
 0x387   : > { %s2537_s24 = scalar_lea.hbm %s2676_s25, %s2461_s9  ;;  %p1927_p8 = por %p1926_p5, %p1925_p13 }
 0x388   : > { %p1921_p7 = pneg %p1920_p12 }
 0x38a   : > { %p1928_p0 = pnand %p1927_p8, %p1921_p7 }
 0x38c   : > { %1931 = shalt.err (!%p1928_p0)
}
 0x38d   : > { %p2678_p3 = pmov %p2677_p6  ;;  %s2679_s28 = sld [smem:[#allocation33_spill]] }
 0x38e   : > { %s1942_s9 = scalar_lea.vmem %s1157_s1, 256  ;;  %s2069_s10 = smov [#allocation17]  }
 0x38f   : > { %p1943_p10 = scmp.ne.s32.totalorder %s1157_s1, %s1942_s9  ;;  %s1946_s27 = sshll.u32 %s2069_s10, 4  ;;  %s1947_s27 = int_to_ptr.vmem [resolvable:$false] %s1946_s27 }
 0x390   : > { %s1948_s17 = scalar_lea.vmem %s1947_s27, 512  ;;  %p1949_p4 = scmp.lt.s32.totalorder %s1157_s1, %s1947_s27 }
 0x391   : > { %p1944_p11 = pnand %p1943_p10, %p2674_p2  ;;  %p1950_p9 = scmp.lt.s32.totalorder %s1948_s17, %s1942_s9 }
 0x393   : > { %1576 = dma.vmem_to_hbm [thread:$0]  (%p2678_p3), %s1128_s16, 32, %s2679_s28, [#allocation7]  }
 0x394   : > { %p1945_p1 = pneg %p1944_p11  ;;  %p1951_p6 = por %p1950_p9, %p1949_p4 }
 0x396   : > { %p1952_p12 = pnand %p1951_p6, %p1945_p1 }
 0x398   : > { %1955 = shalt.err (!%p1952_p12)
}
 0x399   : > { %s1956_s16 = scalar_lea.hbm %s2537_s24, 256  ;;  %s1960_s23 = scalar_lea.hbm %s2676_s25, 768 }
 0x39a   : > { %p1957_p7 = scmp.ne.s32.totalorder %s2537_s24, %s1956_s16  ;;  %p1961_p8 = scmp.lt.s32.totalorder %s2537_s24, %s2676_s25 }
 0x39b   : > { %p1962_p0 = scmp.lt.s32.totalorder %s1960_s23, %s1956_s16 }
 0x39c   : > { %p1958_p13 = pnand %p1957_p7, %p2674_p2 }
 0x39d   : > { %p1963_p3 = por %p1962_p0, %p1961_p8 }
 0x39e   : > { %p1959_p5 = pneg %p1958_p13 }
 0x3a0   : > { %p1964_p10 = pnand %p1963_p3, %p1959_p5 }
 0x3a2   : > { %1967 = shalt.err (!%p1964_p10)
}
 0x3a3   : > { %1578 = dma.vmem_to_hbm [thread:$0]  (%p2674_p2), %s1157_s1, 256, %s2537_s24, %s1101_s29, %s2065_s5, %s2065_s5, %s2066_s7  }
 0x3a4   : > { %s1554_s9 = spop %1553  ;;  %s1486_s11 = sshll.u32 %s2150_s21, 7 }
 0x3a5   : > { %s1556_s10 = spop %1555  ;;  %s1188_s29 = sshll.u32 %s506_s30, 4  ;;  %s1189_s29 = int_to_ptr.vmem [resolvable:$true] %s1188_s29 }
 0x3a6   : > { %s1081_s27 = smul.f32 8.0, %s1556_s10  ;;  %s2680_s1 = sld [smem:[#allocation36_spill]] }
 0x3a7   : > { %s1968_s28 = scalar_lea.vmem %s1189_s29, 128 }
 0x3a8   : > { %s1082_s17 = sadd.f32 %s1554_s9, %s1081_s27  ;;  %p1969_p11 = scmp.ne.s32.totalorder %s1189_s29, %s1968_s28 }
 0x3a9   : > { %s2070_s9 = smov [#allocation20]  }
 0x3aa   : > { %p1970_p1 = pnand %p1969_p11, %p2674_p2  ;;  %s1972_s10 = sshll.u32 %s2070_s9, 4  ;;  %s1973_s10 = int_to_ptr.vmem [resolvable:$false] %s1972_s10 }
 0x3ab   : > { %s1974_s27 = scalar_lea.vmem %s1973_s10, 256  ;;  %p1975_p9 = scmp.lt.s32.totalorder %s1189_s29, %s1973_s10 }
 0x3ac   : > { %s1186_s19 = scalar_lea.hbm %s2680_s1, %s1486_s11  ;;  %p1971_p4 = pneg %p1970_p1 }
 0x3ad   : > { %p1976_p6 = scmp.lt.s32.totalorder %s1974_s27, %s1968_s28 }
 0x3af   : > { %p1977_p12 = por %p1976_p6, %p1975_p9 }
 0x3b1   : > { %p1978_p7 = pnand %p1977_p12, %p1971_p4 }
 0x3e5   : > { %v1085_v3 = vpop.xlane.xlu1 %1084 }
 0x3e6   : > { %v1086_v49 = vrot.slane %v1085_v3, 4 }
 0x3e8   : > { %v1087_v50 = vadd.f32 %v1086_v49, %v1085_v3 }
 0x3ea   : > { %v1088_v51 = vrot.slane %v1087_v50, 2 }
 0x3ec   : > { %v1089_v52 = vadd.f32 %v1088_v51, %v1087_v50 }
 0x3ee   : > { %v1090_v53 = vrot.slane %v1089_v52, 1 }
 0x3f0   : > { %v1091_v54 = vadd.f32 %v1090_v53, %v1089_v52 }
 0x3f2   : > { %1557 = vpush %v1091_v54 }
 0x423   : > { %s1558_s16 = spop %1557 }
 0x424   : > { %s1093_s15 = sadd.f32 %s1558_s16, %s1082_s17 }
 0x426   : > { %s1096_s23 = smul.f32 0.0625, %s1093_s15 }
 0x428   : > { %s1097_s5 = ssub.f32 0.0, %s1096_s23 }
 0x42a   : > { %v1098_v55 = vstv %s1097_s5 }
 0x42b   : > { %1099 = vst [vmem:[%s506_s30] sm:$0xff] %v1098_v55 }
 0x42c   : > { %1981 = shalt.err (!%p1978_p7)
}
 0x42d   : > { %s1982_s17 = scalar_lea.hbm %s1186_s19, 128  ;;  %s1986_s16 = scalar_lea.hbm %s2680_s1, 384 }
 0x42e   : > { %p1983_p13 = scmp.ne.s32.totalorder %s1186_s19, %s1982_s17  ;;  %p1987_p0 = scmp.lt.s32.totalorder %s1186_s19, %s2680_s1 }
 0x42f   : > { %p1988_p3 = scmp.lt.s32.totalorder %s1986_s16, %s1982_s17 }
 0x430   : > { %p1984_p5 = pnand %p1983_p13, %p2674_p2 }
 0x431   : > { %p1989_p10 = por %p1988_p3, %p1987_p0 }
 0x432   : > { %p1985_p8 = pneg %p1984_p5 }
 0x434   : > { %p1990_p11 = pnand %p1989_p10, %p1985_p8 }
 0x436   : > { %1993 = shalt.err (!%p1990_p11)
}
 0x437   : > { %1580 = dma.vmem_to_hbm [thread:$0]  (%p2674_p2), %s1189_s29, 128, %s1186_s19, %s1111_s26  }
 0x438   : > { %p2681_p1 = scmp.eq.s32.totalorder %s2150_s21, 2 }
 0x43a   : > { %2023 = dma.done.wait (%p2681_p1), [#allocation7], 32   ;;  %p2682_p4 = pmov %p2681_p1 }
 0x43c   : > { %2025 = vsyncadd (%p2682_p4), [#allocation7], 4294967264 }
 0x43d PF: > { %s2683_s23 = sld [smem:[#allocation28_spill]]  ;;  %p1626_p9 = scmp.ge.s32.totalorder %s2048_s20, 2 }
 0x43e   : > { %s2684_s5 = sadd.s32 4294967294, %s2048_s20  }
 0x43f   : > { %s1204_s7 = sand.u32 1, %s2684_s5  }
 0x440   : > { %s1205_s13 = scalar_lea.sflag [#allocation16], %s1204_s7 }
 0x443   : > { %p2685_p6 = scmp.ne.s32.totalorder %s2683_s23, 0 }
 0x445   : > { %p1605_p12 = pnand %p1626_p9, %p2685_p6 }
 0x447   : > { %p1606_p7 = pneg %p1605_p12 }
 0x449   : > { %2027 = dma.done.wait (%p1606_p7), %s1205_s13, 512  }
 0x44a   : > { %2029 = vsyncadd (%p1606_p7), %s1205_s13, 4294966784  ;;  %s1223_s14 = scalar_lea.sflag [#allocation19], %s1204_s7 }
 0x44b   : > { %2031 = dma.done.wait (%p1606_p7), %s1223_s14, 384  }
 0x44c   : > { %2033 = vsyncadd (%p1606_p7), %s1223_s14, 4294966912  ;;  %s2686_s20 = sld [smem:[#allocation29_spill]]  ;;  %s2689_s17 = smov %s2040_s18 }
 0x44d   : > { %s2687_s21 = sld [smem:[#allocation27_spill]] }
 0x44e   : > { %s2688_s19 = sld [smem:[#allocation30_spill]] }
 0x452   : > { %p31_p2 = scmp.ge.s32.totalorder %s2686_s20, 5  }
 0x453   : > { %s2690_s18 = smov %s2687_s21 }
 0x454   :  { %33 = sbr.rel (!%p31_p2) target bundleno = 17 (0x11), region = 177 }
 0x459   :  { %1237 = vsyncpa [#allocation6], 1 }
 0x45a   :  { %1239 = vsyncpa [#allocation6 + $0x1], 1 }
 0x45b   :  { %1240 = vsyncpa [#allocation9], 1 }
 0x45c   :  { %1241 = vsyncpa [#allocation12], 1 }
 0x45d   :  { %1243 = vsyncpa [#allocation12 + $0x1], 1 }
 0x45e   :  { %1244 = vsyncpa [#allocation7], 1 }
 0x45f   :  { %1246 = vsyncpa [#allocation7 + $0x1], 1 }
 0x460   :  { %1247 = vsyncpa [#allocation16], 1 }
 0x461   :  { %1249 = vsyncpa [#allocation16 + $0x1], 1 }
 0x462   :  { %1250 = vsyncpa [#allocation19], 1 }
 0x463   :  { %1252 = vsyncpa [#allocation19 + $0x1], 1 }

</bundles_post_ra>
